<compile_context>
chip_gen: v6e
topology: v6e:2x2x1
jax: 0.10.0
libtpu: 0.0.40
codegen_flags: <defaults>
</compile_context>

<pallas_src>
import math

import numpy as np
import jax
import jax.numpy as jnp
from jax.experimental import pallas as pl
from jax.experimental.pallas import tpu as pltpu

# ------------------------- module hyper-parameters -------------------------
Z_DIM = 32
C_DIM = 8
W_DIM = 32
NUM_WS = 4
NUM_LAYERS = 8
LR_MULT = 0.01          # lr_multiplier for the mapping fc layers
EMBED = W_DIM           # embed_features defaults to w_dim (c_dim > 0)
LAYER_FEAT = W_DIM      # layer_features defaults to w_dim
IN0 = Z_DIM + EMBED     # fan-in of fc0
LRELU_SLOPE = 0.2
LRELU_GAIN = math.sqrt(2.0)
B_TILE = 128            # batch rows per grid step (MXU row tile on v5e)


# --------------------------------- kernel ----------------------------------
def mapping_kernel(z_ref, c_ref, emb_w_ref, w0z_ref, w0y_ref, wr_ref, b_ref,
                   out_ref):
    # ---- z path: normalize_2nd_moment(z) ----
    z = z_ref[...]
    x = z * jax.lax.rsqrt(jnp.mean(z * z, axis=1, keepdims=True) + 1e-8)

    # ---- c path: y = normalize_2nd_moment(embed(c)) ----
    # emb_w is pre-scaled by 1/sqrt(c_dim); b_ref[0] is the (pre-broadcast)
    # embed bias, so the add is a plain vreg add.
    c = c_ref[...]
    y = jnp.dot(c, emb_w_ref[...], preferred_element_type=jnp.float32) + b_ref[0]
    y = y * jax.lax.rsqrt(jnp.mean(y * y, axis=1, keepdims=True) + 1e-8)

    # ---- fc0 as two matmuls (no concat on the critical path) ----
    # w0z/w0y are pre-scaled by g0*sqrt(2); b_ref[1] by lr_mult*sqrt(2).
    h = (jnp.dot(x, w0z_ref[...], preferred_element_type=jnp.float32)
         + jnp.dot(y, w0y_ref[...], preferred_element_type=jnp.float32)
         + b_ref[1])
    h = jnp.where(h >= 0, h, LRELU_SLOPE * h)

    # ---- fc1 .. fc7 (static unroll; wr packed lane-dense [W_DIM, 7*W_DIM]) ----
    for i in range(NUM_LAYERS - 1):
        w_i = wr_ref[:, i * W_DIM:(i + 1) * W_DIM]          # static slice
        h = jnp.dot(h, w_i, preferred_element_type=jnp.float32) + b_ref[i + 2]
        h = jnp.where(h >= 0, h, LRELU_SLOPE * h)

    # ---- broadcast to num_ws as one lane-dense [tile, NUM_WS*W_DIM] store ----
    out_ref[...] = jnp.concatenate([h] * NUM_WS, axis=-1)    # == jnp.tile(h,(1,NUM_WS))


# --------------------------------- wrapper ----------------------------------
def _round_up(n, m):
    return ((n + m - 1) // m) * m


def mapping_network(z, c, kparams, *, b_tile=B_TILE):
    """Forward pass; z: [B, Z_DIM], c: [B, C_DIM] -> [B, NUM_WS, W_DIM]."""
    B = z.shape[0]
    z = z.astype(jnp.float32)
    c = c.astype(jnp.float32)

    # Choose the batch tile: small batches run as one program (padded to a
    # multiple of 8 sublanes); large batches are tiled at 128 rows and sharded
    # across grid steps ("parallel" -> both TensorCores on v7x).
    tile = b_tile if B > b_tile else max(8, _round_up(B, 8))
    Bp = _round_up(B, tile)
    if Bp != B:
        z = jnp.pad(z, ((0, Bp - B), (0, 0)))
        c = jnp.pad(c, ((0, Bp - B), (0, 0)))
    grid = (Bp // tile,)

    # Pre-broadcast all biases (embed + 8 fc layers) to [9, tile, W_DIM] so the
    # per-layer bias add inside the kernel is a straight vreg add.
    b_bcast = jnp.broadcast_to(kparams["b"][:, None, :],
                               (NUM_LAYERS + 1, tile, W_DIM))

    inputs = (z, c, kparams["emb_w"], kparams["w0z"], kparams["w0y"],
              kparams["wr"], b_bcast)

    flops = 2 * Bp * (C_DIM * EMBED + IN0 * W_DIM
                      + (NUM_LAYERS - 1) * LAYER_FEAT * W_DIM)
    bytes_accessed = (sum(int(a.size) * a.dtype.itemsize for a in inputs)
                      + Bp * NUM_WS * W_DIM * 4)

    flat = pl.pallas_call(
        mapping_kernel,
        out_shape=jax.ShapeDtypeStruct((Bp, NUM_WS * W_DIM), jnp.float32),
        grid_spec=pltpu.PrefetchScalarGridSpec(
            num_scalar_prefetch=0,
            grid=grid,
            in_specs=[
                pl.BlockSpec((tile, Z_DIM), lambda i: (i, 0)),                  # z
                pl.BlockSpec((tile, C_DIM), lambda i: (i, 0)),                  # c
                pl.BlockSpec((C_DIM, EMBED), lambda i: (0, 0)),                 # emb_w
                pl.BlockSpec((Z_DIM, W_DIM), lambda i: (0, 0)),                 # w0z
                pl.BlockSpec((EMBED, W_DIM), lambda i: (0, 0)),                 # w0y
                pl.BlockSpec((W_DIM, (NUM_LAYERS - 1) * W_DIM),                 # wr
                             lambda i: (0, 0)),
                pl.BlockSpec((NUM_LAYERS + 1, tile, W_DIM),                     # biases
                             lambda i: (0, 0, 0)),
            ],
            out_specs=pl.BlockSpec((tile, NUM_WS * W_DIM), lambda i: (i, 0)),
        ),
        compiler_params=pltpu.CompilerParams(
            dimension_semantics=("parallel",)),
        cost_estimate=pl.CostEstimate(flops=flops,
                                      transcendentals=2 * Bp,
                                      bytes_accessed=bytes_accessed),
    )(*inputs)
    # Drop batch padding; lane-dense [B, NUM_WS*W_DIM] -> [B, NUM_WS, W_DIM].
    return flat[:B].reshape(B, NUM_WS, W_DIM)


# ------------------------- parameter preparation -----------------------------
def prep_params(p):
    """Fold all constant gains into the stored weights/biases (done once)."""
    emb_gain = 1.0 / math.sqrt(C_DIM)               # embed layer: lr_mult = 1
    g0 = LR_MULT / math.sqrt(IN0)
    gr = LR_MULT / math.sqrt(LAYER_FEAT)

    w0 = p["w0"] * (g0 * LRELU_GAIN)                               # [IN0, W_DIM]
    wr = p["wr"] * (gr * LRELU_GAIN)                               # [7, W_DIM, W_DIM]
    # Lane-dense packing: wr_packed[:, i*32:(i+1)*32] == wr[i].
    wr_packed = jnp.transpose(wr, (1, 0, 2)).reshape(W_DIM,
                                                     (NUM_LAYERS - 1) * W_DIM)
    b_fc = jnp.concatenate([p["b0"], p["br"]], axis=0) * (LR_MULT * LRELU_GAIN)
    b_all = jnp.concatenate([p["emb_b"], b_fc], axis=0)            # [9, W_DIM]
    return dict(
        emb_w=p["emb_w"] * emb_gain,                               # [C_DIM, EMBED]
        w0z=w0[:Z_DIM],                                            # [Z_DIM, W_DIM]
        w0y=w0[Z_DIM:],                                            # [EMBED, W_DIM]
        wr=wr_packed,                                              # [W_DIM, 7*W_DIM]
        b=b_all,                                                   # [9, W_DIM]
    )


# ------------------------------ JAX reference --------------------------------
def ref_forward(z, c, p):
    """Unfolded math, mirroring the PyTorch module exactly (raw params)."""
    x = z.astype(jnp.float32)
    x = x * jax.lax.rsqrt(jnp.mean(x * x, axis=1, keepdims=True) + 1e-8)
    y = c.astype(jnp.float32) @ p["emb_w"] * (1.0 / math.sqrt(C_DIM)) + p["emb_b"]
    y = y * jax.lax.rsqrt(jnp.mean(y * y, axis=1, keepdims=True) + 1e-8)
    h = jnp.concatenate([x, y], axis=1)
    h = h @ p["w0"] * (LR_MULT / math.sqrt(IN0)) + p["b0"] * LR_MULT
    h = jnp.where(h >= 0, h, LRELU_SLOPE * h) * LRELU_GAIN
    for i in range(NUM_LAYERS - 1):
        h = (h @ p["wr"][i] * (LR_MULT / math.sqrt(LAYER_FEAT))
             + p["br"][i] * LR_MULT)
        h = jnp.where(h >= 0, h, LRELU_SLOPE * h) * LRELU_GAIN
    return jnp.broadcast_to(h[:, None, :], (z.shape[0], NUM_WS, W_DIM))


# ------------------------------ param init -----------------------------------
def init_params(key):
    # Mirrors FullyConnectedLayer.__init__: weight ~ randn([out, in]) / lr_mult,
    # bias_init = 0 (small random biases here to exercise the bias path).
    # Weights stored pre-transposed to [in, out].
    k = jax.random.split(key, 6)
    emb_w = jax.random.normal(k[0], (C_DIM, EMBED), jnp.float32)            # lr_mult=1
    emb_b = jax.random.normal(k[1], (1, EMBED), jnp.float32) * 0.1
    w0 = jax.random.normal(k[2], (IN0, W_DIM), jnp.float32) / LR_MULT       # fc0 param
    b0 = jax.random.normal(k[3], (1, W_DIM), jnp.float32) * 0.1
    wr = jax.random.normal(k[4], (NUM_LAYERS - 1, W_DIM, W_DIM), jnp.float32) / LR_MULT
    br = jax.random.normal(k[5], (NUM_LAYERS - 1, W_DIM), jnp.float32) * 0.1
    return dict(emb_w=emb_w, emb_b=emb_b, w0=w0, b0=b0, wr=wr, br=br)


if __name__ == "__main__":
    key = jax.random.PRNGKey(0)
    kz, kc, kp, kz2, kc2 = jax.random.split(key, 5)
    raw_params = init_params(kp)
    kparams = jax.tree_util.tree_map(jax.block_until_ready, prep_params(raw_params))

    # Batch scaled up to amortize call overhead / fill MXU rows; grid=(2,) of
    # 128-row tiles -> both TensorCores on v7x, still one tiny call elsewhere.
    B1 = 256
    z1 = jax.random.normal(kz, (B1, Z_DIM), jnp.float32)
    c1 = jax.random.normal(kc, (B1, C_DIM), jnp.float32)
    out1 = jax.block_until_ready(mapping_network(z1, c1, kparams))
    ref1 = jax.block_until_ready(ref_forward(z1, c1, raw_params))
    np.testing.assert_allclose(np.asarray(out1), np.asarray(ref1),
                               rtol=1e-5, atol=1e-5)
    assert out1.shape == (B1, NUM_WS, W_DIM)

    # Small, non-aligned batch exercising the padding path (single grid step).
    B2 = 20
    z2 = jax.random.normal(kz2, (B2, Z_DIM), jnp.float32)
    c2 = jax.random.normal(kc2, (B2, C_DIM), jnp.float32)
    out2 = jax.block_until_ready(mapping_network(z2, c2, kparams))
    ref2 = jax.block_until_ready(ref_forward(z2, c2, raw_params))
    np.testing.assert_allclose(np.asarray(out2), np.asarray(ref2),
                               rtol=1e-5, atol=1e-5)
    assert out2.shape == (B2, NUM_WS, W_DIM)

    print("KERNEL_OK")
</pallas_src>

<mosaic_0001>
module attributes {stable_mosaic.version = 11 : i64} {
  func.func @mapping_kernel(%arg0: i32, %arg1: memref<128x32xf32, #tpu.memory_space<vmem>>, %arg2: memref<128x8xf32, #tpu.memory_space<vmem>>, %arg3: memref<8x32xf32, #tpu.memory_space<vmem>>, %arg4: memref<32x32xf32, #tpu.memory_space<vmem>>, %arg5: memref<32x32xf32, #tpu.memory_space<vmem>>, %arg6: memref<32x224xf32, #tpu.memory_space<vmem>>, %arg7: memref<9x128x32xf32, #tpu.memory_space<vmem>>, %arg8: memref<128x128xf32, #tpu.memory_space<vmem>>) attributes {dimension_semantics = [#tpu.dimension_semantics<parallel>], iteration_bounds = array<i64: 2>, scalar_prefetch = 0 : i64, scratch_operands = 0 : i64, tpu.core_type = #tpu.core_type<tc>, window_params = [{transform_indices = @transform_0, window_bounds = array<i64: 128, 32>}, {transform_indices = @transform_1, window_bounds = array<i64: 128, 8>}, {pipeline_mode = #tpu.pipeline_mode<synchronous>, transform_indices = @transform_2, window_bounds = array<i64: 8, 32>}, {pipeline_mode = #tpu.pipeline_mode<synchronous>, transform_indices = @transform_3, window_bounds = array<i64: 32, 32>}, {pipeline_mode = #tpu.pipeline_mode<synchronous>, transform_indices = @transform_4, window_bounds = array<i64: 32, 32>}, {pipeline_mode = #tpu.pipeline_mode<synchronous>, transform_indices = @transform_5, window_bounds = array<i64: 32, 224>}, {pipeline_mode = #tpu.pipeline_mode<synchronous>, transform_indices = @transform_6, window_bounds = array<i64: 9, 128, 32>}, {transform_indices = @transform_7, window_bounds = array<i64: 128, 128>}]} {
    %c0 = arith.constant 0 : index
    %c0_0 = arith.constant 0 : index
    %0 = vector.load %arg1[%c0, %c0_0] : memref<128x32xf32, #tpu.memory_space<vmem>>, vector<128x32xf32>
    %1 = arith.mulf %0, %0 : vector<128x32xf32>
    %cst = arith.constant dense<0.000000e+00> : vector<128xf32>
    %2 = vector.multi_reduction <add>, %1, %cst [1] : vector<128x32xf32> to vector<128xf32>
    %3 = vector.shape_cast %2 : vector<128xf32> to vector<128x1xf32>
    %cst_1 = arith.constant 3.200000e+01 : f32
    %4 = vector.broadcast %cst_1 : f32 to vector<128x1xf32>
    %5 = arith.divf %3, %4 : vector<128x1xf32>
    %cst_2 = arith.constant 9.99999993E-9 : f32
    %6 = vector.broadcast %cst_2 : f32 to vector<128x1xf32>
    %7 = arith.addf %5, %6 : vector<128x1xf32>
    %8 = math.rsqrt %7 : vector<128x1xf32>
    %9 = vector.broadcast %8 : vector<128x1xf32> to vector<128x32xf32>
    %10 = arith.mulf %0, %9 : vector<128x32xf32>
    %c0_3 = arith.constant 0 : index
    %c0_4 = arith.constant 0 : index
    %11 = vector.load %arg2[%c0_3, %c0_4] : memref<128x8xf32, #tpu.memory_space<vmem>>, vector<128x8xf32>
    %c0_5 = arith.constant 0 : index
    %c0_6 = arith.constant 0 : index
    %12 = vector.load %arg3[%c0_5, %c0_6] : memref<8x32xf32, #tpu.memory_space<vmem>>, vector<8x32xf32>
    %cst_7 = arith.constant dense<0.000000e+00> : vector<128x32xf32>
    %13 = tpu.matmul %11, %12, %cst_7 {dimension_numbers = #tpu.dot_dimension_numbers<[1], [0], [0], [1], [0, 0, 1, 1], [], []>} : vector<128x8xf32>, vector<8x32xf32>, vector<128x32xf32> -> vector<128x32xf32>
    %c0_8 = arith.constant 0 : index
    %c0_9 = arith.constant 0 : index
    %c0_10 = arith.constant 0 : index
    %14 = vector.load %arg7[%c0_8, %c0_9, %c0_10] : memref<9x128x32xf32, #tpu.memory_space<vmem>>, vector<1x128x32xf32>
    %15 = vector.shape_cast %14 : vector<1x128x32xf32> to vector<128x32xf32>
    %16 = arith.addf %13, %15 : vector<128x32xf32>
    %17 = arith.mulf %16, %16 : vector<128x32xf32>
    %cst_11 = arith.constant dense<0.000000e+00> : vector<128xf32>
    %18 = vector.multi_reduction <add>, %17, %cst_11 [1] : vector<128x32xf32> to vector<128xf32>
    %19 = vector.shape_cast %18 : vector<128xf32> to vector<128x1xf32>
    %cst_12 = arith.constant 3.200000e+01 : f32
    %20 = vector.broadcast %cst_12 : f32 to vector<128x1xf32>
    %21 = arith.divf %19, %20 : vector<128x1xf32>
    %cst_13 = arith.constant 9.99999993E-9 : f32
    %22 = vector.broadcast %cst_13 : f32 to vector<128x1xf32>
    %23 = arith.addf %21, %22 : vector<128x1xf32>
    %24 = math.rsqrt %23 : vector<128x1xf32>
    %25 = vector.broadcast %24 : vector<128x1xf32> to vector<128x32xf32>
    %26 = arith.mulf %16, %25 : vector<128x32xf32>
    %c0_14 = arith.constant 0 : index
    %c0_15 = arith.constant 0 : index
    %27 = vector.load %arg4[%c0_14, %c0_15] : memref<32x32xf32, #tpu.memory_space<vmem>>, vector<32x32xf32>
    %cst_16 = arith.constant dense<0.000000e+00> : vector<128x32xf32>
    %28 = tpu.matmul %10, %27, %cst_16 {dimension_numbers = #tpu.dot_dimension_numbers<[1], [0], [0], [1], [0, 0, 1, 1], [], []>} : vector<128x32xf32>, vector<32x32xf32>, vector<128x32xf32> -> vector<128x32xf32>
    %c0_17 = arith.constant 0 : index
    %c0_18 = arith.constant 0 : index
    %29 = vector.load %arg5[%c0_17, %c0_18] : memref<32x32xf32, #tpu.memory_space<vmem>>, vector<32x32xf32>
    %cst_19 = arith.constant dense<0.000000e+00> : vector<128x32xf32>
    %30 = tpu.matmul %26, %29, %cst_19 {dimension_numbers = #tpu.dot_dimension_numbers<[1], [0], [0], [1], [0, 0, 1, 1], [], []>} : vector<128x32xf32>, vector<32x32xf32>, vector<128x32xf32> -> vector<128x32xf32>
    %31 = arith.addf %28, %30 : vector<128x32xf32>
    %c1 = arith.constant 1 : index
    %c0_20 = arith.constant 0 : index
    %c0_21 = arith.constant 0 : index
    %32 = vector.load %arg7[%c1, %c0_20, %c0_21] : memref<9x128x32xf32, #tpu.memory_space<vmem>>, vector<1x128x32xf32>
    %33 = vector.shape_cast %32 : vector<1x128x32xf32> to vector<128x32xf32>
    %34 = arith.addf %31, %33 : vector<128x32xf32>
    %cst_22 = arith.constant 0.000000e+00 : f32
    %35 = vector.broadcast %cst_22 : f32 to vector<128x32xf32>
    %36 = arith.cmpf oge, %34, %35 : vector<128x32xf32>
    %cst_23 = arith.constant 2.000000e-01 : f32
    %37 = vector.broadcast %cst_23 : f32 to vector<128x32xf32>
    %38 = arith.mulf %37, %34 : vector<128x32xf32>
    %39 = arith.select %36, %34, %38 : vector<128x32xi1>, vector<128x32xf32>
    %c0_24 = arith.constant 0 : index
    %c0_25 = arith.constant 0 : index
    %40 = vector.load %arg6[%c0_24, %c0_25] : memref<32x224xf32, #tpu.memory_space<vmem>>, vector<32x32xf32>
    %cst_26 = arith.constant dense<0.000000e+00> : vector<128x32xf32>
    %41 = tpu.matmul %39, %40, %cst_26 {dimension_numbers = #tpu.dot_dimension_numbers<[1], [0], [0], [1], [0, 0, 1, 1], [], []>} : vector<128x32xf32>, vector<32x32xf32>, vector<128x32xf32> -> vector<128x32xf32>
    %c2 = arith.constant 2 : index
    %c0_27 = arith.constant 0 : index
    %c0_28 = arith.constant 0 : index
    %42 = vector.load %arg7[%c2, %c0_27, %c0_28] : memref<9x128x32xf32, #tpu.memory_space<vmem>>, vector<1x128x32xf32>
    %43 = vector.shape_cast %42 : vector<1x128x32xf32> to vector<128x32xf32>
    %44 = arith.addf %41, %43 : vector<128x32xf32>
    %cst_29 = arith.constant 0.000000e+00 : f32
    %45 = vector.broadcast %cst_29 : f32 to vector<128x32xf32>
    %46 = arith.cmpf oge, %44, %45 : vector<128x32xf32>
    %cst_30 = arith.constant 2.000000e-01 : f32
    %47 = vector.broadcast %cst_30 : f32 to vector<128x32xf32>
    %48 = arith.mulf %47, %44 : vector<128x32xf32>
    %49 = arith.select %46, %44, %48 : vector<128x32xi1>, vector<128x32xf32>
    %c0_31 = arith.constant 0 : index
    %c32 = arith.constant 32 : index
    %50 = vector.load %arg6[%c0_31, %c32] : memref<32x224xf32, #tpu.memory_space<vmem>>, vector<32x32xf32>
    %cst_32 = arith.constant dense<0.000000e+00> : vector<128x32xf32>
    %51 = tpu.matmul %49, %50, %cst_32 {dimension_numbers = #tpu.dot_dimension_numbers<[1], [0], [0], [1], [0, 0, 1, 1], [], []>} : vector<128x32xf32>, vector<32x32xf32>, vector<128x32xf32> -> vector<128x32xf32>
    %c3 = arith.constant 3 : index
    %c0_33 = arith.constant 0 : index
    %c0_34 = arith.constant 0 : index
    %52 = vector.load %arg7[%c3, %c0_33, %c0_34] : memref<9x128x32xf32, #tpu.memory_space<vmem>>, vector<1x128x32xf32>
    %53 = vector.shape_cast %52 : vector<1x128x32xf32> to vector<128x32xf32>
    %54 = arith.addf %51, %53 : vector<128x32xf32>
    %cst_35 = arith.constant 0.000000e+00 : f32
    %55 = vector.broadcast %cst_35 : f32 to vector<128x32xf32>
    %56 = arith.cmpf oge, %54, %55 : vector<128x32xf32>
    %cst_36 = arith.constant 2.000000e-01 : f32
    %57 = vector.broadcast %cst_36 : f32 to vector<128x32xf32>
    %58 = arith.mulf %57, %54 : vector<128x32xf32>
    %59 = arith.select %56, %54, %58 : vector<128x32xi1>, vector<128x32xf32>
    %c0_37 = arith.constant 0 : index
    %c64 = arith.constant 64 : index
    %60 = vector.load %arg6[%c0_37, %c64] : memref<32x224xf32, #tpu.memory_space<vmem>>, vector<32x32xf32>
    %cst_38 = arith.constant dense<0.000000e+00> : vector<128x32xf32>
    %61 = tpu.matmul %59, %60, %cst_38 {dimension_numbers = #tpu.dot_dimension_numbers<[1], [0], [0], [1], [0, 0, 1, 1], [], []>} : vector<128x32xf32>, vector<32x32xf32>, vector<128x32xf32> -> vector<128x32xf32>
    %c4 = arith.constant 4 : index
    %c0_39 = arith.constant 0 : index
    %c0_40 = arith.constant 0 : index
    %62 = vector.load %arg7[%c4, %c0_39, %c0_40] : memref<9x128x32xf32, #tpu.memory_space<vmem>>, vector<1x128x32xf32>
    %63 = vector.shape_cast %62 : vector<1x128x32xf32> to vector<128x32xf32>
    %64 = arith.addf %61, %63 : vector<128x32xf32>
    %cst_41 = arith.constant 0.000000e+00 : f32
    %65 = vector.broadcast %cst_41 : f32 to vector<128x32xf32>
    %66 = arith.cmpf oge, %64, %65 : vector<128x32xf32>
    %cst_42 = arith.constant 2.000000e-01 : f32
    %67 = vector.broadcast %cst_42 : f32 to vector<128x32xf32>
    %68 = arith.mulf %67, %64 : vector<128x32xf32>
    %69 = arith.select %66, %64, %68 : vector<128x32xi1>, vector<128x32xf32>
    %c0_43 = arith.constant 0 : index
    %c96 = arith.constant 96 : index
    %70 = vector.load %arg6[%c0_43, %c96] : memref<32x224xf32, #tpu.memory_space<vmem>>, vector<32x32xf32>
    %cst_44 = arith.constant dense<0.000000e+00> : vector<128x32xf32>
    %71 = tpu.matmul %69, %70, %cst_44 {dimension_numbers = #tpu.dot_dimension_numbers<[1], [0], [0], [1], [0, 0, 1, 1], [], []>} : vector<128x32xf32>, vector<32x32xf32>, vector<128x32xf32> -> vector<128x32xf32>
    %c5 = arith.constant 5 : index
    %c0_45 = arith.constant 0 : index
    %c0_46 = arith.constant 0 : index
    %72 = vector.load %arg7[%c5, %c0_45, %c0_46] : memref<9x128x32xf32, #tpu.memory_space<vmem>>, vector<1x128x32xf32>
    %73 = vector.shape_cast %72 : vector<1x128x32xf32> to vector<128x32xf32>
    %74 = arith.addf %71, %73 : vector<128x32xf32>
    %cst_47 = arith.constant 0.000000e+00 : f32
    %75 = vector.broadcast %cst_47 : f32 to vector<128x32xf32>
    %76 = arith.cmpf oge, %74, %75 : vector<128x32xf32>
    %cst_48 = arith.constant 2.000000e-01 : f32
    %77 = vector.broadcast %cst_48 : f32 to vector<128x32xf32>
    %78 = arith.mulf %77, %74 : vector<128x32xf32>
    %79 = arith.select %76, %74, %78 : vector<128x32xi1>, vector<128x32xf32>
    %c0_49 = arith.constant 0 : index
    %c128 = arith.constant 128 : index
    %80 = vector.load %arg6[%c0_49, %c128] : memref<32x224xf32, #tpu.memory_space<vmem>>, vector<32x32xf32>
    %cst_50 = arith.constant dense<0.000000e+00> : vector<128x32xf32>
    %81 = tpu.matmul %79, %80, %cst_50 {dimension_numbers = #tpu.dot_dimension_numbers<[1], [0], [0], [1], [0, 0, 1, 1], [], []>} : vector<128x32xf32>, vector<32x32xf32>, vector<128x32xf32> -> vector<128x32xf32>
    %c6 = arith.constant 6 : index
    %c0_51 = arith.constant 0 : index
    %c0_52 = arith.constant 0 : index
    %82 = vector.load %arg7[%c6, %c0_51, %c0_52] : memref<9x128x32xf32, #tpu.memory_space<vmem>>, vector<1x128x32xf32>
    %83 = vector.shape_cast %82 : vector<1x128x32xf32> to vector<128x32xf32>
    %84 = arith.addf %81, %83 : vector<128x32xf32>
    %cst_53 = arith.constant 0.000000e+00 : f32
    %85 = vector.broadcast %cst_53 : f32 to vector<128x32xf32>
    %86 = arith.cmpf oge, %84, %85 : vector<128x32xf32>
    %cst_54 = arith.constant 2.000000e-01 : f32
    %87 = vector.broadcast %cst_54 : f32 to vector<128x32xf32>
    %88 = arith.mulf %87, %84 : vector<128x32xf32>
    %89 = arith.select %86, %84, %88 : vector<128x32xi1>, vector<128x32xf32>
    %c0_55 = arith.constant 0 : index
    %c160 = arith.constant 160 : index
    %90 = vector.load %arg6[%c0_55, %c160] : memref<32x224xf32, #tpu.memory_space<vmem>>, vector<32x32xf32>
    %cst_56 = arith.constant dense<0.000000e+00> : vector<128x32xf32>
    %91 = tpu.matmul %89, %90, %cst_56 {dimension_numbers = #tpu.dot_dimension_numbers<[1], [0], [0], [1], [0, 0, 1, 1], [], []>} : vector<128x32xf32>, vector<32x32xf32>, vector<128x32xf32> -> vector<128x32xf32>
    %c7 = arith.constant 7 : index
    %c0_57 = arith.constant 0 : index
    %c0_58 = arith.constant 0 : index
    %92 = vector.load %arg7[%c7, %c0_57, %c0_58] : memref<9x128x32xf32, #tpu.memory_space<vmem>>, vector<1x128x32xf32>
    %93 = vector.shape_cast %92 : vector<1x128x32xf32> to vector<128x32xf32>
    %94 = arith.addf %91, %93 : vector<128x32xf32>
    %cst_59 = arith.constant 0.000000e+00 : f32
    %95 = vector.broadcast %cst_59 : f32 to vector<128x32xf32>
    %96 = arith.cmpf oge, %94, %95 : vector<128x32xf32>
    %cst_60 = arith.constant 2.000000e-01 : f32
    %97 = vector.broadcast %cst_60 : f32 to vector<128x32xf32>
    %98 = arith.mulf %97, %94 : vector<128x32xf32>
    %99 = arith.select %96, %94, %98 : vector<128x32xi1>, vector<128x32xf32>
    %c0_61 = arith.constant 0 : index
    %c192 = arith.constant 192 : index
    %100 = vector.load %arg6[%c0_61, %c192] : memref<32x224xf32, #tpu.memory_space<vmem>>, vector<32x32xf32>
    %cst_62 = arith.constant dense<0.000000e+00> : vector<128x32xf32>
    %101 = tpu.matmul %99, %100, %cst_62 {dimension_numbers = #tpu.dot_dimension_numbers<[1], [0], [0], [1], [0, 0, 1, 1], [], []>} : vector<128x32xf32>, vector<32x32xf32>, vector<128x32xf32> -> vector<128x32xf32>
    %c8 = arith.constant 8 : index
    %c0_63 = arith.constant 0 : index
    %c0_64 = arith.constant 0 : index
    %102 = vector.load %arg7[%c8, %c0_63, %c0_64] : memref<9x128x32xf32, #tpu.memory_space<vmem>>, vector<1x128x32xf32>
    %103 = vector.shape_cast %102 : vector<1x128x32xf32> to vector<128x32xf32>
    %104 = arith.addf %101, %103 : vector<128x32xf32>
    %cst_65 = arith.constant 0.000000e+00 : f32
    %105 = vector.broadcast %cst_65 : f32 to vector<128x32xf32>
    %106 = arith.cmpf oge, %104, %105 : vector<128x32xf32>
    %cst_66 = arith.constant 2.000000e-01 : f32
    %107 = vector.broadcast %cst_66 : f32 to vector<128x32xf32>
    %108 = arith.mulf %107, %104 : vector<128x32xf32>
    %109 = arith.select %106, %104, %108 : vector<128x32xi1>, vector<128x32xf32>
    %110 = tpu.concatenate %109, %109, %109, %109 in 1 : vector<128x32xf32>, vector<128x32xf32>, vector<128x32xf32>, vector<128x32xf32> -> vector<128x128xf32>
    %c0_67 = arith.constant 0 : index
    %c0_68 = arith.constant 0 : index
    %111 = vector.load %arg8[%c0_67, %c0_68] : memref<128x128xf32, #tpu.memory_space<vmem>>, vector<128x128xf32>
    tpu.vector_store %arg8[%c0_67, %c0_68], %110 {strides = array<i32>} : memref<128x128xf32, #tpu.memory_space<vmem>>, vector<128x128xf32>,
    return
  }
  func.func @transform_0(%arg0: i32) -> (i32, i32) {
    %c0_i32 = arith.constant 0 : i32
    %c0_i32_0 = arith.constant 0 : i32
    return %arg0, %c0_i32 : i32, i32
  }
  func.func @transform_1(%arg0: i32) -> (i32, i32) {
    %c0_i32 = arith.constant 0 : i32
    %c0_i32_0 = arith.constant 0 : i32
    return %arg0, %c0_i32 : i32, i32
  }
  func.func @transform_2(%arg0: i32) -> (i32, i32) {
    %c0_i32 = arith.constant 0 : i32
    %c0_i32_0 = arith.constant 0 : i32
    %c0_i32_1 = arith.constant 0 : i32
    return %c0_i32, %c0_i32_0 : i32, i32
  }
  func.func @transform_3(%arg0: i32) -> (i32, i32) {
    %c0_i32 = arith.constant 0 : i32
    %c0_i32_0 = arith.constant 0 : i32
    %c0_i32_1 = arith.constant 0 : i32
    return %c0_i32, %c0_i32_0 : i32, i32
  }
  func.func @transform_4(%arg0: i32) -> (i32, i32) {
    %c0_i32 = arith.constant 0 : i32
    %c0_i32_0 = arith.constant 0 : i32
    %c0_i32_1 = arith.constant 0 : i32
    return %c0_i32, %c0_i32_0 : i32, i32
  }
  func.func @transform_5(%arg0: i32) -> (i32, i32) {
    %c0_i32 = arith.constant 0 : i32
    %c0_i32_0 = arith.constant 0 : i32
    %c0_i32_1 = arith.constant 0 : i32
    return %c0_i32, %c0_i32_0 : i32, i32
  }
  func.func @transform_6(%arg0: i32) -> (i32, i32, i32) {
    %c0_i32 = arith.constant 0 : i32
    %c0_i32_0 = arith.constant 0 : i32
    %c0_i32_1 = arith.constant 0 : i32
    %c0_i32_2 = arith.constant 0 : i32
    return %c0_i32, %c0_i32_0, %c0_i32_1 : i32, i32, i32
  }
  func.func @transform_7(%arg0: i32) -> (i32, i32) {
    %c0_i32 = arith.constant 0 : i32
    %c0_i32_0 = arith.constant 0 : i32
    return %arg0, %c0_i32 : i32, i32
  }
}

</mosaic_0001>

<bundles_post_ra>
// kernel: tpu_custom_call.1
= control target key start
LH: loop header
LB: loop body
LE: loop exit
PB: predicated region body
PF: predicated region fallthrough
CT: control target
= control target key end

     0   :  { %12 = vsyncpa [#allocation3], 0  ;;  %s5748_s0 = inlined_call_operand.vmem [shape: f32[256,32], index: 0, kind: input, shape index: {}]   ;;  %s5749_s1 = inlined_call_operand.vmem [shape: f32[256,8], index: 1, kind: input, shape index: {}]   ;;  %s5750_s2 = inlined_call_operand.vmem [shape: f32[8,32], index: 2, kind: input, shape index: {}]   ;;  %s5751_s3 = inlined_call_operand.vmem [shape: f32[32,32], index: 3, kind: input, shape index: {}]   ;;  %s5752_s4 = inlined_call_operand.vmem [shape: f32[32,32], index: 4, kind: input, shape index: {}]   ;;  %s5753_s5 = inlined_call_operand.vmem [shape: f32[32,224], index: 5, kind: input, shape index: {}]   ;;  %s5754_s6 = inlined_call_operand.vmem [shape: f32[9,128,32], index: 6, kind: input, shape index: {}]   ;;  %s5755_s7 = inlined_call_operand.hbm [shape: f32[256,128], index: 7, kind: output, shape index: {}]  }
   0x1   :  { %14 = vsyncpa [#allocation3 + $0x1], 0  ;;  %s4504_s24 = smov 0   ;;  %s4506_s25 = smov 0  }
   0x2   :  { %s4508_s26 = smov 0   ;;  %s4510_s27 = smov 0  }
   0x3 LB: > { %s4525_s28 = sadd.s32 4294967295, %s4456_s27   ;;  %s3474_s29 = sadd.s32 4294967294, %s4456_s27   ;;  %s4456_s27 = sphi %s4510_s27, %s5761_s27   ;;  %s4452_s26 = sphi %s4508_s26, %s5760_s26   ;;  %s4448_s25 = sphi %s4506_s25, %s5759_s25   ;;  %s4444_s24 = sphi %s4504_s24, %s5758_s24  }
   0x4   : > { %s4529_s30 = sadd.s32 1, %s4456_s27   ;;  %s184_s8 = sadd.s32 1, %s4452_s26 }
   0x5   : > { %s181_s9 = ssub.s32 %s4456_s27, %s4529_s30  ;;  %p194_p0 = scmp.ne.s32.totalorder %s4452_s26, %s4448_s25 }
   0x6   : > { %p182_p1 = scmp.eq.s32.totalorder %s181_s9, 0  ;;  %p195_p2 = scmp.eq.s32.totalorder %s4525_s28, 1 }
   0x7   : > { %p200_p3 = scmp.ne.s32.totalorder %s4448_s25, %s4444_s24  ;;  %p201_p4 = scmp.eq.s32.totalorder %s3474_s29, 1 }
   0x8   : > { %s4540_s10 = scalar_select %p182_p1, %s4452_s26, %s184_s8  }
   0x9   : > { %p4542_p5 = por %p195_p2, %p194_p0  ;;  %p4546_p6 = por %p201_p4, %p200_p3 }
   0xa   : > { %p3477_p7 = scmp.ge.s32.totalorder %s4456_s27, 1  ;;  %p252_p8 = scmp.lt.s32.totalorder %s4456_s27, 3 }
   0xc   : > { %p253_p9 = pnand %p3477_p7, %p252_p8 }
   0xd   : > { %s3479_s15 = sshll.u32 (!%p253_p9), %s4525_s28, 4  ;;  %s4458_s8 = smov (!%p253_p9), 96  }
   0xe   : > { %256 = sbr.rel (%p253_p9) target bundleno = 2214 (0x8a6), region = 48  ;;  %p290_p10 = scmp.lt.s32.totalorder (!%p253_p9), %s3479_s15, 31 }
   0xf   : > { %s4459_s17 = smov (!%p253_p9), 64   ;;  %s4460_s14 = smov (!%p253_p9), 32  }
  0x10   : > { %s4461_s29 = smov (!%p253_p9), [#allocation2]  }
  0x11   : > { %s4400_s9 = sshll.u32 (!%p253_p9), %s4461_s29, 4  ;;  %s4401_s9 = int_to_ptr.vmem [resolvable:$false] %s4400_s9 }
  0x12   : > { %s4402_s13 = scalar_lea.vmem (!%p253_p9), %s4401_s9, 4096 }
  0x13   : > { %v464_v0 = vld [vmem:[%s5750_s2] sm:$0xff]  ;;  %s5763_s15 = smov (!%p290_p10, %s3479_s15), 31  ;;  %vm481_vm0 = vcmask 64512   ;;  %vm334_vm1 = vcmask 261120   ;;  %v806_v41 = vld [vmem:[%s5751_s3 + $0x18] sm:$0xff]  ;;  %v805_v42 = vld [vmem:[%s5751_s3 + $0x10] sm:$0xff] }
  0x14   : > { %3974 = vmatprep.subr.mxu0 %v464_v0  ;;  %s3480_s16 = sshll.u32 %s5763_s15, 3  ;;  %v804_v43 = vld [vmem:[%s5751_s3 + $0x8] sm:$0xff]  ;;  %v803_v44 = vld [vmem:[%s5751_s3] sm:$0xff] }
  0x15   : > { %3975 = vmatpush3.msra.mxu0 %v464_v0  ;;  %s4559_s19 = scalar_lea.vmem %s5749_s1, %s3480_s16  ;;  %s4568_s22 = scalar_lea.vmem %s5748_s0, %s3480_s16 }
  0x16   : > { %v448_v1 = vld [vmem:[%s4559_s19] sm:$0xff]  ;;  %v449_v2 = vld [vmem:[%s4559_s19 + $0x8] sm:$0xff]  ;;  %v450_v3 = vld [vmem:[%s4559_s19 + $0x10] sm:$0xff]  ;;  %4032 = vmatprep.subr.mxu0 %v806_v41  ;;  %s286_s16 = sand.u32 1, %s4448_s25  }
  0x17   : > { %3976 = vmatprep.mubr.msk.f32.mxu0 %vm481_vm0, %v448_v1  ;;  %v451_v4 = vld [vmem:[%s4559_s19 + $0x18] sm:$0xff]  ;;  %v452_v5 = vld [vmem:[%s4559_s19 + $0x20] sm:$0xff]  ;;  %v4578_v7 = vld [vmem:[%s4568_s22 + $0x8] sm:$0xff]  ;;  %s3478_s18 = sshll.u32 %s286_s16, 7 }
  0x18   : > { %3977 = vmatmul.mubr.msk.f32.vlgmr.msra.gmra.mxu0 %vm481_vm0, %v449_v2  ;;  %v4575_v6 = vld [vmem:[%s4568_s22] sm:$0xff]  ;;  %v319_v9 = vmul.f32 %v4578_v7, %v4578_v7  ;;  %v4586_v10 = vld [vmem:[%s4568_s22 + $0x10] sm:$0xff]  ;;  %v453_v11 = vld [vmem:[%s4559_s19 + $0x28] sm:$0xff] }
  0x19   : > { %3979 = vmatprep.mubr.msk.f32.mxu0 %vm481_vm0, %v450_v3  ;;  %v318_v8 = vmul.f32 %v4575_v6, %v4575_v6  ;;  %v320_v12 = vmul.f32 %v4586_v10, %v4586_v10  ;;  %v4593_v13 = vld [vmem:[%s4568_s22 + $0x18] sm:$0xff]  ;;  %v454_v14 = vld [vmem:[%s4559_s19 + $0x30] sm:$0xff]  ;;  %v4605_v20 = vld [vmem:[%s4568_s22 + $0x20] sm:$0xff]  ;;  %4033 = vmatpush3.msra.mxu0 %v806_v41 }
  0x1a   : > { %v338_v16 = vsel %vm334_vm1, %v319_v9, 0.0  ;;  %v321_v18 = vmul.f32 %v4593_v13, %v4593_v13  ;;  %v455_v19 = vld [vmem:[%s4559_s19 + $0x38] sm:$0xff]  ;;  %v456_v21 = vld [vmem:[%s4559_s19 + $0x40] sm:$0xff]  ;;  %v322_v23 = vmul.f32 %v4605_v20, %v4605_v20  ;;  %v457_v24 = vld [vmem:[%s4559_s19 + $0x48] sm:$0xff]  ;;  %4034 = vmatprep.subr.mxu0 %v805_v42 }
  0x1b   : > { %v335_v15 = vsel %vm334_vm1, %v318_v8, 0.0  ;;  %339 = vadd.xlane.f32.xlu1 %v338_v16  ;;  %v341_v17 = vsel %vm334_vm1, %v320_v12, 0.0  ;;  %v4615_v25 = vld [vmem:[%s4568_s22 + $0x28] sm:$0xff]  ;;  %v458_v26 = vld [vmem:[%s4559_s19 + $0x50] sm:$0xff]  ;;  %v459_v29 = vld [vmem:[%s4559_s19 + $0x58] sm:$0xff]  ;;  %4035 = vmatpush3.msra.mxu0 %v805_v42 }
  0x1c   : > { %3980 = vmatmul.mubr.msk.f32.gmra.mxu0 %vm481_vm0, %v451_v4  ;;  %336 = vadd.xlane.f32.xlu0 %v335_v15  ;;  %v344_v22 = vsel %vm334_vm1, %v321_v18, 0.0  ;;  %v347_v27 = vsel %vm334_vm1, %v322_v23, 0.0  ;;  %v323_v28 = vmul.f32 %v4615_v25, %v4615_v25  ;;  %v4625_v30 = vld [vmem:[%s4568_s22 + $0x30] sm:$0xff]  ;;  %v460_v31 = vld [vmem:[%s4559_s19 + $0x60] sm:$0xff]  ;;  %v461_v34 = vld [vmem:[%s4559_s19 + $0x68] sm:$0xff] }
  0x1d   : > { %3982 = vmatprep.mubr.msk.f32.mxu0 %vm481_vm0, %v452_v5  ;;  %v324_v33 = vmul.f32 %v4625_v30, %v4625_v30  ;;  %v462_v35 = vld [vmem:[%s4559_s19 + $0x70] sm:$0xff]  ;;  %v463_v37 = vld [vmem:[%s4559_s19 + $0x78] sm:$0xff]  ;;  %4036 = vmatprep.subr.mxu0 %v804_v43  ;;  %v466_v2 = vld [vmem:[%s5754_s6 + $0x8] sm:$0xff] }
  0x1e   : > { %v350_v32 = vsel %vm334_vm1, %v323_v28, 0.0  ;;  %v4641_v38 = vld [vmem:[%s4568_s22 + $0x38] sm:$0xff]  ;;  %4037 = vmatpush3.msra.mxu0 %v804_v43  ;;  %v465_v5 = vld [vmem:[%s5754_s6] sm:$0xff]  ;;  %v4715_v42 = vld [vmem:[%s4568_s22 + $0x50] sm:$0xff] }
  0x1f   : > { %v353_v36 = vsel %vm334_vm1, %v324_v33, 0.0  ;;  %v325_v39 = vmul.f32 %v4641_v38, %v4641_v38  ;;  %4038 = vmatprep.subr.mxu0 %v803_v44  ;;  %v4673_v8 = vld [vmem:[%s4568_s22 + $0x40] sm:$0xff] }
  0x20   : > { %3983 = vmatmul.mubr.msk.f32.gmra.mxu0 %vm481_vm0, %v453_v11  ;;  %342 = vadd.xlane.f32.xlu0 %v341_v17  ;;  %v467_v17 = vld [vmem:[%s5754_s6 + $0x10] sm:$0xff]  ;;  %v326_v18 = vmul.f32 %v4673_v8, %v4673_v8  ;;  %v469_v33 = vld [vmem:[%s5754_s6 + $0x20] sm:$0xff] }
  0x21   : > { %3985 = vmatprep.mubr.msk.f32.mxu0 %vm481_vm0, %v454_v14  ;;  %v356_v40 = vsel %vm334_vm1, %v325_v39, 0.0  ;;  %4039 = vmatpush3.msra.mxu0 %v803_v44 }
  0x24   : > { %3986 = vmatmul.mubr.msk.f32.gmra.mxu0 %vm481_vm0, %v455_v19  ;;  %345 = vadd.xlane.f32.xlu0 %v344_v22 }
  0x25   : > { %3988 = vmatprep.mubr.msk.f32.mxu0 %vm481_vm0, %v456_v21 }
  0x28   : > { %3989 = vmatmul.mubr.msk.f32.gmra.mxu0 %vm481_vm0, %v457_v24  ;;  %348 = vadd.xlane.f32.xlu0 %v347_v27  ;;  %v4696_v27 = vld [vmem:[%s4568_s22 + $0x48] sm:$0xff] }
  0x29   : > { %3991 = vmatprep.mubr.msk.f32.mxu0 %vm481_vm0, %v458_v26  ;;  %v470_v26 = vld [vmem:[%s5754_s6 + $0x28] sm:$0xff] }
  0x2c   : > { %3992 = vmatmul.mubr.msk.f32.gmra.mxu0 %vm481_vm0, %v459_v29  ;;  %351 = vadd.xlane.f32.xlu0 %v350_v32 }
  0x2d   : > { %3994 = vmatprep.mubr.msk.f32.mxu0 %vm481_vm0, %v460_v31 }
  0x30   : > { %3995 = vmatmul.mubr.msk.f32.gmra.mxu0 %vm481_vm0, %v461_v34  ;;  %354 = vadd.xlane.f32.xlu0 %v353_v36  ;;  %v359_v34 = vsel %vm334_vm1, %v326_v18, 0.0  ;;  %v473_v18 = vld [vmem:[%s5754_s6 + $0x40] sm:$0xff] }
  0x31   : > { %3997 = vmatprep.mubr.msk.f32.mxu0 %vm481_vm0, %v462_v35 }
  0x34   : > { %3998 = vmatmul.mubr.msk.f32.gmra.mxu0 %vm481_vm0, %v463_v37  ;;  %357 = vadd.xlane.f32.xlu0 %v356_v40  ;;  %v327_v40 = vmul.f32 %v4696_v27, %v4696_v27 }
  0xa4   : > { %v340_v46 = vpop.xlane.xlu1 %339 }
  0xa5   : > { %v337_v45 = vpop.xlane.xlu0 %336  ;;  %v385_v48 = vmul.f32 0.03125, %v340_v46 }
  0xa6   : > { %v384_v47 = vmul.f32 0.03125, %v337_v45 }
  0xa7   : > { %v401_v50 = vadd.f32 1e-08, %v385_v48  ;;  %v472_v48 = vld [vmem:[%s5754_s6 + $0x38] sm:$0xff] }
  0xa8   : > { %v400_v49 = vadd.f32 1e-08, %v384_v47 }
  0xa9   : > { %v343_v51 = vpop.xlane.xlu0 %342 }
  0xaa   : > { %4332 = vrsqrt.f32 %v400_v49  ;;  %v386_v52 = vmul.f32 0.03125, %v343_v51  ;;  %v362_v51 = vsel %vm334_vm1, %v327_v40, 0.0  ;;  %v810_v40 = vld [vmem:[%s5752_s4 + $0x18] sm:$0xff] }
  0xab   : > { %4334 = vrsqrt.f32 %v401_v50  ;;  %4000 = vmatprep.subr.mxu1 %v810_v40 }
  0xac   : > { %v402_v53 = vadd.f32 1e-08, %v386_v52  ;;  %v328_v52 = vmul.f32 %v4715_v42, %v4715_v42  ;;  %4001 = vmatpush3.msra.mxu1 %v810_v40 }
  0xad   : > { %v346_v60 = vpop.xlane.xlu0 %345 }
  0xae   : > { %4336 = vrsqrt.f32 %v402_v53  ;;  %v387_v62 = vmul.f32 0.03125, %v346_v60  ;;  %v4729_v53 = vld [vmem:[%s4568_s22 + $0x58] sm:$0xff]  ;;  %v471_v60 = vld [vmem:[%s5754_s6 + $0x30] sm:$0xff] }
  0xb0   : > { %v403_v63 = vadd.f32 1e-08, %v387_v62  ;;  %v329_v62 = vmul.f32 %v4729_v53, %v4729_v53 }
  0xb1   : > { %v349_v61 = vpop.xlane.xlu0 %348 }
  0xb2   : > { %v388_v1 = vmul.f32 0.03125, %v349_v61  ;;  %4338 = vrsqrt.f32 %v403_v63  ;;  %v4745_v63 = vld [vmem:[%s4568_s22 + $0x60] sm:$0xff] }
  0xb5   : > { %v352_v0 = vpop.xlane.xlu0 %351 }
  0xb6   : > { %v389_v3 = vmul.f32 0.03125, %v352_v0 }
  0xb7   : > { %v4333_v54 = vpop.eup %4332 }
  0xb8   : > { %v4335_v55 = vpop.eup %4334  ;;  %v432_v56 = vmul.f32 %v4333_v54, %v4575_v6  ;;  %v404_v6 = vadd.f32 1e-08, %v388_v1  ;;  %v405_v11 = vadd.f32 1e-08, %v389_v3 }
  0xb9   : > { %v433_v57 = vmul.f32 %v4335_v55, %v4578_v7  ;;  %v355_v15 = vpop.xlane.xlu0 %354 }
  0xba   : > { %4040 = vmatprep.mubr.msk.f32.mxu0 %vm334_vm1, %v432_v56  ;;  %4340 = vrsqrt.f32 %v404_v6  ;;  %v390_v19 = vmul.f32 0.03125, %v355_v15 }
  0xbb   : > { %v4337_v58 = vpop.eup %4336  ;;  %4041 = vmatmul.mubr.msk.f32.vlgmr.msra.gmra.mxu0 %vm334_vm1, %v433_v57  ;;  %4342 = vrsqrt.f32 %v405_v11  ;;  %v4760_v11 = vld [vmem:[%s4568_s22 + $0x68] sm:$0xff] }
  0xbc   : > { %v434_v59 = vmul.f32 %v4337_v58, %v4586_v10  ;;  %v468_v10 = vld [vmem:[%s5754_s6 + $0x18] sm:$0xff]  ;;  %v406_v35 = vadd.f32 1e-08, %v390_v19 }
  0xbd   : > { %v358_v47 = vpop.xlane.xlu0 %357 }
  0xbe   : > { %4043 = vmatprep.mubr.msk.f32.mxu0 %vm334_vm1, %v434_v59  ;;  %4344 = vrsqrt.f32 %v406_v35  ;;  %v391_v50 = vmul.f32 0.03125, %v358_v47  ;;  %v475_v47 = vld [vmem:[%s5754_s6 + $0x50] sm:$0xff] }
  0xbf   : > { %v4339_v43 = vpop.eup %4338 }
  0xc0   : > { %v407_v54 = vadd.f32 1e-08, %v391_v50  ;;  %v435_v55 = vmul.f32 %v4339_v43, %v4593_v13  ;;  %v365_v13 = vsel %vm334_vm1, %v328_v52, 0.0 }
  0xc2   : > { %4346 = vrsqrt.f32 %v407_v54  ;;  %4044 = vmatmul.mubr.msk.f32.gmra.mxu0 %vm334_vm1, %v435_v55 }
  0xc7   : > { %v4341_v61 = vpop.eup %4340 }
  0xc8   : > { %v4343_v0 = vpop.eup %4342  ;;  %v436_v6 = vmul.f32 %v4341_v61, %v4605_v20 }
  0xca   : > { %4046 = vmatprep.mubr.msk.f32.mxu0 %vm334_vm1, %v436_v6 }
  0xcb   : > { %v4345_v19 = vpop.eup %4344 }
  0xd8   : > { %v3978_v4 = vpop.f32.mrf.mxu0 }
  0xd9   : > { %v4670_v7 = vadd.f32 %v3978_v4, %v466_v2  ;;  %v474_v4 = vld [vmem:[%s5754_s6 + $0x48] sm:$0xff] }
  0xda   : > { %v596_v9 = vpop.f32.mrf.mxu0 }
  0xdb   : > { %v4678_v12 = vadd.f32 %v596_v9, %v465_v5  ;;  %v676_v14 = vmul.f32 %v4670_v7, %v4670_v7  ;;  %v368_v9 = vsel %vm334_vm1, %v329_v62, 0.0 }
  0xdc   : > { %v3981_v16 = vpop.f32.mrf.mxu0 }
  0xdd   : > { %v4687_v21 = vadd.f32 %v3981_v16, %v468_v10  ;;  %v694_v22 = vsel %vm334_vm1, %v676_v14, 0.0  ;;  %v675_v23 = vmul.f32 %v4678_v12, %v4678_v12  ;;  %v330_v10 = vmul.f32 %v4745_v63, %v4745_v63 }
  0xde   : > { %695 = vadd.xlane.f32.xlu1 %v694_v22  ;;  %v606_v24 = vpop.f32.mrf.mxu0  ;;  %v437_v14 = vmul.f32 %v4343_v0, %v4615_v25  ;;  %v331_v25 = vmul.f32 %v4760_v11, %v4760_v11  ;;  %v477_v0 = vld [vmem:[%s5754_s6 + $0x60] sm:$0xff] }
  0xdf   : > { %v4698_v28 = vadd.f32 %v606_v24, %v467_v17  ;;  %v691_v29 = vsel %vm334_vm1, %v675_v23, 0.0  ;;  %v678_v31 = vmul.f32 %v4687_v21, %v4687_v21  ;;  %v371_v22 = vsel %vm334_vm1, %v330_v10, 0.0  ;;  %v4777_v23 = vld [vmem:[%s4568_s22 + $0x70] sm:$0xff] }
  0xe0   : > { %692 = vadd.xlane.f32.xlu0 %v691_v29  ;;  %v3984_v32 = vpop.f32.mrf.mxu0  ;;  %4047 = vmatmul.mubr.msk.f32.gmra.mxu0 %vm334_vm1, %v437_v14  ;;  %v374_v35 = vsel %vm334_vm1, %v331_v25, 0.0 }
  0xe1   : > { %v700_v36 = vsel %vm334_vm1, %v678_v31, 0.0  ;;  %v4708_v37 = vadd.f32 %v3984_v32, %v470_v26  ;;  %v677_v39 = vmul.f32 %v4698_v28, %v4698_v28  ;;  %v476_v31 = vld [vmem:[%s5754_s6 + $0x58] sm:$0xff] }
  0xe2   : > { %701 = vadd.xlane.f32.xlu1 %v700_v36  ;;  %v616_v41 = vpop.f32.mrf.mxu0  ;;  %v332_v36 = vmul.f32 %v4777_v23, %v4777_v23 }
  0xe3   : > { %v697_v44 = vsel %vm334_vm1, %v677_v39, 0.0  ;;  %v4718_v45 = vadd.f32 %v616_v41, %v469_v33  ;;  %v680_v46 = vmul.f32 %v4708_v37, %v4708_v37  ;;  %v438_v33 = vmul.f32 %v4345_v19, %v4625_v30  ;;  %v4792_v39 = vld [vmem:[%s4568_s22 + $0x78] sm:$0xff] }
  0xe4   : > { %v3987_v49 = vpop.f32.mrf.mxu0  ;;  %360 = vadd.xlane.f32.xlu0 %v359_v34  ;;  %v4347_v34 = vpop.eup %4346 }
  0xe5   : > { %v706_v56 = vsel %vm334_vm1, %v680_v46, 0.0  ;;  %v4733_v57 = vadd.f32 %v3987_v49, %v472_v48  ;;  %v679_v58 = vmul.f32 %v4718_v45, %v4718_v45  ;;  %4049 = vmatprep.mubr.msk.f32.mxu0 %vm334_vm1, %v438_v33  ;;  %v439_v41 = vmul.f32 %v4347_v34, %v4641_v38  ;;  %v809_v48 = vld [vmem:[%s5752_s4 + $0x10] sm:$0xff] }
  0xe6   : > { %698 = vadd.xlane.f32.xlu1 %v697_v44  ;;  %v626_v59 = vpop.f32.mrf.mxu0  ;;  %v377_v38 = vsel %vm334_vm1, %v332_v36, 0.0  ;;  %v333_v49 = vmul.f32 %v4792_v39, %v4792_v39  ;;  %4002 = vmatprep.subr.mxu1 %v809_v48 }
  0xe7   : > { %v703_v1 = vsel %vm334_vm1, %v679_v58, 0.0  ;;  %v4748_v2 = vadd.f32 %v626_v59, %v471_v60  ;;  %v682_v3 = vmul.f32 %v4733_v57, %v4733_v57  ;;  %4050 = vmatmul.mubr.msk.f32.gmra.mxu0 %vm334_vm1, %v439_v41  ;;  %4003 = vmatpush3.msra.mxu1 %v809_v48  ;;  %v807_v59 = vld [vmem:[%s5752_s4] sm:$0xff] }
  0xe8   : > { %363 = vadd.xlane.f32.xlu0 %v362_v51  ;;  %v3990_v5 = vpop.f32.mrf.mxu0  ;;  %v808_v51 = vld [vmem:[%s5752_s4 + $0x8] sm:$0xff]  ;;  %v380_v60 = vsel %vm334_vm1, %v333_v49, 0.0 }
  0xe9   : > { %v712_v15 = vsel %vm334_vm1, %v682_v3, 0.0  ;;  %v4765_v16 = vadd.f32 %v3990_v5, %v474_v4  ;;  %v681_v20 = vmul.f32 %v4748_v2, %v4748_v2  ;;  %4004 = vmatprep.subr.mxu1 %v808_v51 }
  0xea   : > { %707 = vadd.xlane.f32.xlu1 %v706_v56  ;;  %v636_v17 = vpop.f32.mrf.mxu0  ;;  %v478_v56 = vld [vmem:[%s5754_s6 + $0x68] sm:$0xff]  ;;  %4005 = vmatpush3.msra.mxu1 %v808_v51 }
  0xeb   : > { %v709_v24 = vsel %vm334_vm1, %v681_v20, 0.0  ;;  %v4780_v26 = vadd.f32 %v636_v17, %v473_v18  ;;  %v684_v29 = vmul.f32 %v4765_v16, %v4765_v16  ;;  %4006 = vmatprep.subr.mxu1 %v807_v59  ;;  %v480_v20 = vld [vmem:[%s5754_s6 + $0x78] sm:$0xff] }
  0xec   : > { %366 = vadd.xlane.f32.xlu0 %v365_v13  ;;  %v3993_v32 = vpop.f32.mrf.mxu0  ;;  %4007 = vmatpush3.msra.mxu1 %v807_v59 }
  0xed   : > { %v718_v43 = vsel %vm334_vm1, %v684_v29, 0.0  ;;  %v4800_v30 = vadd.f32 %v3993_v32, %v476_v31  ;;  %v683_v44 = vmul.f32 %v4780_v26, %v4780_v26  ;;  %v4865_v29 = vld [vmem:[%s5753_s5 + $0x30] sm:$0xff] }
  0xee   : > { %704 = vadd.xlane.f32.xlu1 %v703_v1  ;;  %v646_v46 = vpop.f32.mrf.mxu0  ;;  %4064 = vmatprep.subr.mxu1 %v4865_v29 }
  0xef   : > { %v715_v52 = vsel %vm334_vm1, %v683_v44, 0.0  ;;  %v4818_v54 = vadd.f32 %v646_v46, %v475_v47  ;;  %v686_v55 = vmul.f32 %v4800_v30, %v4800_v30 }
  0xf0   : > { %369 = vadd.xlane.f32.xlu0 %v368_v9  ;;  %v3996_v50 = vpop.f32.mrf.mxu0  ;;  %v479_v9 = vld [vmem:[%s5754_s6 + $0x70] sm:$0xff] }
  0xf1   : > { %v724_v61 = vsel %vm334_vm1, %v686_v55, 0.0  ;;  %v4830_v13 = vadd.f32 %v3996_v50, %v478_v56  ;;  %v685_v62 = vmul.f32 %v4818_v54, %v4818_v54 }
  0xf2   : > { %713 = vadd.xlane.f32.xlu1 %v712_v15  ;;  %v656_v58 = vpop.f32.mrf.mxu0 }
  0xf3   : > { %v721_v3 = vsel %vm334_vm1, %v685_v62, 0.0  ;;  %v4838_v4 = vadd.f32 %v656_v58, %v477_v0  ;;  %v688_v5 = vmul.f32 %v4830_v13, %v4830_v13 }
  0xf4   : > { %372 = vadd.xlane.f32.xlu0 %v371_v22  ;;  %v3999_v1 = vpop.f32.mrf.mxu0 }
  0xf5   : > { %v730_v10 = vsel %vm334_vm1, %v688_v5, 0.0  ;;  %v687_v15 = vmul.f32 %v4838_v4, %v4838_v4  ;;  %v4853_v17 = vadd.f32 %v3999_v1, %v480_v20 }
  0xf6   : > { %710 = vadd.xlane.f32.xlu1 %v709_v24  ;;  %v666_v6 = vpop.f32.mrf.mxu0 }
  0xf7   : > { %v4846_v14 = vadd.f32 %v666_v6, %v479_v9  ;;  %v727_v18 = vsel %vm334_vm1, %v687_v15, 0.0  ;;  %v690_v25 = vmul.f32 %v4853_v17, %v4853_v17 }
  0xf8   : > { %375 = vadd.xlane.f32.xlu0 %v374_v35 }
  0xf9   : > { %v689_v19 = vmul.f32 %v4846_v14, %v4846_v14  ;;  %v736_v24 = vsel %vm334_vm1, %v690_v25, 0.0 }
  0xfa   : > { %719 = vadd.xlane.f32.xlu1 %v718_v43 }
  0xfb   : > { %v733_v22 = vsel %vm334_vm1, %v689_v19, 0.0 }
  0xfc   : > { %378 = vadd.xlane.f32.xlu0 %v377_v38 }
  0xfe   : > { %716 = vadd.xlane.f32.xlu1 %v715_v52 }
 0x100   : > { %381 = vadd.xlane.f32.xlu0 %v380_v60 }
 0x102   : > { %725 = vadd.xlane.f32.xlu1 %v724_v61 }
 0x106   : > { %722 = vadd.xlane.f32.xlu1 %v721_v3 }
 0x10a   : > { %731 = vadd.xlane.f32.xlu1 %v730_v10 }
 0x10e   : > { %728 = vadd.xlane.f32.xlu1 %v727_v18 }
 0x112   : > { %734 = vadd.xlane.f32.xlu1 %v733_v22 }
 0x116   : > { %737 = vadd.xlane.f32.xlu1 %v736_v24  ;;  %v4874_v24 = vld [vmem:[%s5753_s5 + $0x20] sm:$0xff]  ;;  %1567 = vrot.lane.b32.xlu0 %v4865_v29, %s4458_s8 }
 0x11a   : > { %1837 = vrot.lane.b32.xlu0 %v4865_v29, %s4459_s17 }
 0x127   : > { %1565 = vrot.lane.b32.xlu1 %v4874_v24, %s4458_s8 }
 0x167   : > { %v696_v31 = vpop.xlane.xlu1 %695 }
 0x168   : > { %v740_v32 = vmul.f32 0.03125, %v696_v31 }
 0x169   : > { %v693_v33 = vpop.xlane.xlu0 %692 }
 0x16a   : > { %v756_v34 = vadd.f32 1e-08, %v740_v32  ;;  %v739_v35 = vmul.f32 0.03125, %v693_v33 }
 0x16b   : > { %v702_v36 = vpop.xlane.xlu1 %701 }
 0x16c   : > { %v755_v40 = vadd.f32 1e-08, %v739_v35  ;;  %v742_v41 = vmul.f32 0.03125, %v702_v36  ;;  %4348 = vrsqrt.f32 %v756_v34  ;;  %v4882_v36 = vld [vmem:[%s5753_s5 + $0x10] sm:$0xff] }
 0x16d   : > { %v361_v43 = vpop.xlane.xlu0 %360  ;;  %1563 = vrot.lane.b32.xlu1 %v4882_v36, %s4458_s8  ;;  %1833 = vrot.lane.b32.xlu0 %v4882_v36, %s4459_s17 }
 0x16e   : > { %4350 = vrsqrt.f32 %v755_v40  ;;  %v392_v44 = vmul.f32 0.03125, %v361_v43  ;;  %v758_v46 = vadd.f32 1e-08, %v742_v41 }
 0x16f   : > { %v699_v47 = vpop.xlane.xlu1 %698 }
 0x170   : > { %v741_v48 = vmul.f32 0.03125, %v699_v47  ;;  %v408_v38 = vadd.f32 1e-08, %v392_v44 }
 0x171   : > { %v364_v49 = vpop.xlane.xlu0 %363  ;;  %2107 = vrot.lane.b32.xlu0 %v4865_v29, %s4460_s14 }
 0x172   : > { %v757_v50 = vadd.f32 1e-08, %v741_v48  ;;  %4352 = vrsqrt.f32 %v408_v38  ;;  %v393_v51 = vmul.f32 0.03125, %v364_v49 }
 0x173   : > { %4354 = vrsqrt.f32 %v758_v46  ;;  %v708_v52 = vpop.xlane.xlu1 %707 }
 0x174   : > { %4356 = vrsqrt.f32 %v757_v50  ;;  %v744_v55 = vmul.f32 0.03125, %v708_v52  ;;  %v409_v56 = vadd.f32 1e-08, %v393_v51 }
 0x175   : > { %v367_v58 = vpop.xlane.xlu0 %366  ;;  %2103 = vrot.lane.b32.xlu0 %v4882_v36, %s4460_s14 }
 0x176   : > { %4358 = vrsqrt.f32 %v409_v56  ;;  %v394_v59 = vmul.f32 0.03125, %v367_v58  ;;  %v760_v60 = vadd.f32 1e-08, %v744_v55 }
 0x177   : > { %v705_v61 = vpop.xlane.xlu1 %704 }
 0x178   : > { %v743_v62 = vmul.f32 0.03125, %v705_v61  ;;  %v410_v0 = vadd.f32 1e-08, %v394_v59 }
 0x179   : > { %v370_v1 = vpop.xlane.xlu0 %369  ;;  %v4349_v3 = vpop.eup %4348 }
 0x17a   : > { %v759_v5 = vadd.f32 1e-08, %v743_v62  ;;  %4360 = vrsqrt.f32 %v410_v0  ;;  %v395_v6 = vmul.f32 0.03125, %v370_v1  ;;  %v788_v19 = vmul.f32 %v4349_v3, %v4670_v7 }
 0x17b   : > { %v4351_v9 = vpop.eup %4350  ;;  %4362 = vrsqrt.f32 %v760_v60  ;;  %v714_v10 = vpop.xlane.xlu1 %713 }
 0x17c   : > { %4364 = vrsqrt.f32 %v759_v5  ;;  %v746_v15 = vmul.f32 0.03125, %v714_v10  ;;  %v787_v20 = vmul.f32 %v4351_v9, %v4678_v12  ;;  %v411_v18 = vadd.f32 1e-08, %v395_v6 }
 0x17d   : > { %v373_v22 = vpop.xlane.xlu0 %372 }
 0x17e   : > { %4008 = vmatprep.mubr.msk.f32.mxu1 %vm334_vm1, %v787_v20  ;;  %4366 = vrsqrt.f32 %v411_v18  ;;  %v396_v25 = vmul.f32 0.03125, %v373_v22  ;;  %v762_v32 = vadd.f32 1e-08, %v746_v15 }
 0x17f   : > { %v4353_v31 = vpop.eup %4352  ;;  %v711_v33 = vpop.xlane.xlu1 %710  ;;  %4009 = vmatmul.mubr.msk.f32.vlgmr.msra.gmra.mxu1 %vm334_vm1, %v788_v19 }
 0x180   : > { %v4355_v34 = vpop.eup %4354  ;;  %v745_v12 = vmul.f32 0.03125, %v711_v33  ;;  %v412_v35 = vadd.f32 1e-08, %v396_v25  ;;  %v440_v7 = vmul.f32 %v4353_v31, %v4673_v8  ;;  %4065 = vmatpush3.msra.mxu1 %v4865_v29 }
 0x181   : > { %v4357_v40 = vpop.eup %4356  ;;  %v376_v41 = vpop.xlane.xlu0 %375  ;;  %4066 = vmatprep.subr.mxu1 %v4874_v24  ;;  %v790_v48 = vmul.f32 %v4355_v34, %v4687_v21 }
 0x182   : > { %v761_v43 = vadd.f32 1e-08, %v745_v12  ;;  %v789_v44 = vmul.f32 %v4357_v40, %v4698_v28  ;;  %4368 = vrsqrt.f32 %v412_v35  ;;  %v397_v46 = vmul.f32 0.03125, %v376_v41  ;;  %4052 = vmatprep.mubr.msk.f32.mxu0 %vm334_vm1, %v440_v7  ;;  %4067 = vmatpush3.msra.mxu1 %v4874_v24 }
 0x183   : > { %v4359_v8 = vpop.eup %4358  ;;  %4370 = vrsqrt.f32 %v762_v32  ;;  %v720_v47 = vpop.xlane.xlu1 %719  ;;  %4068 = vmatprep.subr.mxu1 %v4882_v36 }
 0x184   : > { %4372 = vrsqrt.f32 %v761_v43  ;;  %v748_v38 = vmul.f32 0.03125, %v720_v47  ;;  %4011 = vmatprep.mubr.msk.f32.mxu1 %vm334_vm1, %v789_v44  ;;  %v413_v49 = vadd.f32 1e-08, %v397_v46  ;;  %v441_v28 = vmul.f32 %v4359_v8, %v4696_v27  ;;  %4069 = vmatpush3.msra.mxu1 %v4882_v36 }
 0x185   : > { %4012 = vmatmul.mubr.msk.f32.gmra.mxu1 %vm334_vm1, %v790_v48  ;;  %v379_v50 = vpop.xlane.xlu0 %378 }
 0x186   : > { %4374 = vrsqrt.f32 %v413_v49  ;;  %v398_v51 = vmul.f32 0.03125, %v379_v50  ;;  %4053 = vmatmul.mubr.msk.f32.gmra.mxu0 %vm334_vm1, %v441_v28  ;;  %v764_v21 = vadd.f32 1e-08, %v748_v38 }
 0x187   : > { %v4361_v52 = vpop.eup %4360  ;;  %v717_v55 = vpop.xlane.xlu1 %716 }
 0x188   : > { %v4363_v56 = vpop.eup %4362  ;;  %v747_v58 = vmul.f32 0.03125, %v717_v55  ;;  %v414_v59 = vadd.f32 1e-08, %v398_v51  ;;  %v442_v60 = vmul.f32 %v4361_v52, %v4715_v42 }
 0x189   : > { %v4365_v61 = vpop.eup %4364  ;;  %v382_v62 = vpop.xlane.xlu0 %381  ;;  %v792_v6 = vmul.f32 %v4363_v56, %v4708_v37 }
 0x18a   : > { %v763_v27 = vadd.f32 1e-08, %v747_v58  ;;  %v791_v0 = vmul.f32 %v4365_v61, %v4718_v45  ;;  %4376 = vrsqrt.f32 %v414_v59  ;;  %v399_v1 = vmul.f32 0.03125, %v382_v62  ;;  %4055 = vmatprep.mubr.msk.f32.mxu0 %vm334_vm1, %v442_v60  ;;  %v3532_v59 = vld [vmem:[%s5754_s6 + $0x88] sm:$0xff]  ;;  %v3531_v62 = vld [vmem:[%s5754_s6 + $0x80] sm:$0xff] }
 0x18b   : > { %v4367_v3 = vpop.eup %4366  ;;  %4378 = vrsqrt.f32 %v764_v21  ;;  %v726_v5 = vpop.xlane.xlu1 %725 }
 0x18c   : > { %4380 = vrsqrt.f32 %v763_v27  ;;  %v750_v9 = vmul.f32 0.03125, %v726_v5  ;;  %4014 = vmatprep.mubr.msk.f32.mxu1 %vm334_vm1, %v791_v0  ;;  %v415_v10 = vadd.f32 1e-08, %v399_v1  ;;  %v443_v42 = vmul.f32 %v4367_v3, %v4729_v53 }
 0x18d   : > { %4015 = vmatmul.mubr.msk.f32.gmra.mxu1 %vm334_vm1, %v792_v6 }
 0x18e   : > { %4382 = vrsqrt.f32 %v415_v10  ;;  %4056 = vmatmul.mubr.msk.f32.gmra.mxu0 %vm334_vm1, %v443_v42  ;;  %v766_v15 = vadd.f32 1e-08, %v750_v9  ;;  %v3534_v9 = vld [vmem:[%s5754_s6 + $0x98] sm:$0xff] }
 0x18f   : > { %v4369_v45 = vpop.eup %4368  ;;  %v723_v20 = vpop.xlane.xlu1 %722 }
 0x190   : > { %v4371_v18 = vpop.eup %4370  ;;  %v749_v19 = vmul.f32 0.03125, %v723_v20  ;;  %v444_v22 = vmul.f32 %v4369_v45, %v4745_v63  ;;  %4384 = vrsqrt.f32 %v766_v15  ;;  %v3533_v20 = vld [vmem:[%s5754_s6 + $0x90] sm:$0xff] }
 0x191   : > { %v4373_v37 = vpop.eup %4372  ;;  %v794_v33 = vmul.f32 %v4371_v18, %v4733_v57 }
 0x192   : > { %v765_v25 = vadd.f32 1e-08, %v749_v19  ;;  %v793_v31 = vmul.f32 %v4373_v37, %v4748_v2  ;;  %4058 = vmatprep.mubr.msk.f32.mxu0 %vm334_vm1, %v444_v22 }
 0x193   : > { %v4375_v32 = vpop.eup %4374  ;;  %v732_v53 = vpop.xlane.xlu1 %731 }
 0x194   : > { %4386 = vrsqrt.f32 %v765_v25  ;;  %v752_v34 = vmul.f32 0.03125, %v732_v53  ;;  %4017 = vmatprep.mubr.msk.f32.mxu1 %vm334_vm1, %v793_v31  ;;  %v445_v12 = vmul.f32 %v4375_v32, %v4760_v11 }
 0x195   : > { %4018 = vmatmul.mubr.msk.f32.gmra.mxu1 %vm334_vm1, %v794_v33 }
 0x196   : > { %4059 = vmatmul.mubr.msk.f32.gmra.mxu0 %vm334_vm1, %v445_v12  ;;  %v768_v35 = vadd.f32 1e-08, %v752_v34  ;;  %v3536_v34 = vld [vmem:[%s5754_s6 + $0xa8] sm:$0xff] }
 0x197   : > { %v4377_v63 = vpop.eup %4376  ;;  %v729_v2 = vpop.xlane.xlu1 %728 }
 0x198   : > { %v4379_v7 = vpop.eup %4378  ;;  %v751_v40 = vmul.f32 0.03125, %v729_v2  ;;  %v446_v41 = vmul.f32 %v4377_v63, %v4777_v23  ;;  %4388 = vrsqrt.f32 %v768_v35 }
 0x199   : > { %v4381_v43 = vpop.eup %4380  ;;  %v796_v8 = vmul.f32 %v4379_v7, %v4765_v16  ;;  %v3535_v7 = vld [vmem:[%s5754_s6 + $0xa0] sm:$0xff] }
 0x19a   : > { %v767_v44 = vadd.f32 1e-08, %v751_v40  ;;  %v795_v57 = vmul.f32 %v4381_v43, %v4780_v26  ;;  %4061 = vmatprep.mubr.msk.f32.mxu0 %vm334_vm1, %v446_v41 }
 0x19b   : > { %v4383_v46 = vpop.eup %4382  ;;  %v735_v11 = vpop.xlane.xlu1 %734 }
 0x19c   : > { %4390 = vrsqrt.f32 %v767_v44  ;;  %v753_v47 = vmul.f32 0.03125, %v735_v11  ;;  %4020 = vmatprep.mubr.msk.f32.mxu1 %vm334_vm1, %v795_v57  ;;  %v447_v48 = vmul.f32 %v4383_v46, %v4792_v39 }
 0x19d   : > { %4021 = vmatmul.mubr.msk.f32.gmra.mxu1 %vm334_vm1, %v796_v8  ;;  %v4385_v26 = vpop.eup %4384 }
 0x19e   : > { %v769_v23 = vadd.f32 1e-08, %v753_v47  ;;  %4062 = vmatmul.mubr.msk.f32.gmra.mxu0 %vm334_vm1, %v447_v48  ;;  %v798_v16 = vmul.f32 %v4385_v26, %v4800_v30  ;;  %v3538_v47 = vld [vmem:[%s5754_s6 + $0xb8] sm:$0xff] }
 0x19f   : > { %v738_v38 = vpop.xlane.xlu1 %737 }
 0x1a0   : > { %4392 = vrsqrt.f32 %v769_v23  ;;  %v754_v49 = vmul.f32 0.03125, %v738_v38 }
 0x1a1   : > { %v4387_v28 = vpop.eup %4386 }
 0x1a2   : > { %v770_v50 = vadd.f32 1e-08, %v754_v49  ;;  %v797_v51 = vmul.f32 %v4387_v28, %v4818_v54  ;;  %v3537_v49 = vld [vmem:[%s5754_s6 + $0xb0] sm:$0xff] }
 0x1a4   : > { %4394 = vrsqrt.f32 %v770_v50  ;;  %4023 = vmatprep.mubr.msk.f32.mxu1 %vm334_vm1, %v797_v51 }
 0x1a5   : > { %4024 = vmatmul.mubr.msk.f32.gmra.mxu1 %vm334_vm1, %v798_v16  ;;  %v4389_v39 = vpop.eup %4388 }
 0x1a6   : > { %v800_v55 = vmul.f32 %v4389_v39, %v4830_v13  ;;  %v4042_v13 = vpop.f32.mrf.mxu0 }
 0x1a9   : > { %v4391_v52 = vpop.eup %4390 }
 0x1aa   : > { %v799_v21 = vmul.f32 %v4391_v52, %v4838_v4  ;;  %v4934_v4 = vld [vmem:[%s5753_s5] sm:$0xff] }
 0x1ab   : > { %4070 = vmatprep.subr.mxu1 %v4934_v4  ;;  %1561 = vrot.lane.b32.xlu1 %v4934_v4, %s4458_s8 }
 0x1ac   : > { %4026 = vmatprep.mubr.msk.f32.mxu1 %vm334_vm1, %v799_v21  ;;  %4071 = vmatpush3.msra.mxu1 %v4934_v4 }
 0x1ad   : > { %v4393_v56 = vpop.eup %4392  ;;  %4027 = vmatmul.mubr.msk.f32.gmra.mxu1 %vm334_vm1, %v800_v55 }
 0x1ae   : > { %v801_v54 = vmul.f32 %v4393_v56, %v4846_v14  ;;  %v1118_v14 = vpop.f32.mrf.mxu0  ;;  %v3540_v56 = vld [vmem:[%s5754_s6 + $0xc8] sm:$0xff] }
 0x1af   : > { %1835 = vrot.lane.b32.xlu1 %v4874_v24, %s4459_s17 }
 0x1b0   : > { %4029 = vmatprep.mubr.msk.f32.mxu1 %vm334_vm1, %v801_v54  ;;  %v4045_v1 = vpop.f32.mrf.mxu0 }
 0x1b1   : > { %v4395_v30 = vpop.eup %4394 }
 0x1b2   : > { %v802_v58 = vmul.f32 %v4395_v30, %v4853_v17  ;;  %v1128_v45 = vpop.f32.mrf.mxu0 }
 0x1b3   : > { %1831 = vrot.lane.b32.xlu1 %v4934_v4, %s4459_s17 }
 0x1b4   : > { %4030 = vmatmul.mubr.msk.f32.gmra.mxu1 %vm334_vm1, %v802_v58  ;;  %v4048_v31 = vpop.f32.mrf.mxu0 }
 0x1b6   : > { %v1138_v35 = vpop.f32.mrf.mxu0 }
 0x1b7   : > { %2105 = vrot.lane.b32.xlu1 %v4874_v24, %s4460_s14  ;;  %v3582_v24 = vld [vmem:[%s5754_s6 + $0x198] sm:$0xff] }
 0x1b8   : > { %v4051_v57 = vpop.f32.mrf.mxu0 }
 0x1ba   : > { %v1148_v38 = vpop.f32.mrf.mxu0 }
 0x1bb   : > { %2101 = vrot.lane.b32.xlu1 %v4934_v4, %s4460_s14 }
 0x23f   : > { %v4010_v17 = vpop.f32.mrf.mxu1 }
 0x240   : > { %v1124_v60 = vadd.f32 %v4042_v13, %v4010_v17 }
 0x241   : > { %v925_v61 = vpop.f32.mrf.mxu1 }
 0x242   : > { %v1215_v27 = vadd.f32 %v3532_v59, %v1124_v60  ;;  %v1119_v0 = vadd.f32 %v1118_v14, %v925_v61  ;;  %v3539_v14 = vld [vmem:[%s5754_s6 + $0xc0] sm:$0xff] }
 0x244   : > { %v1214_v3 = vadd.f32 %v3531_v62, %v1119_v0  ;;  %v1247_v5 = vmul.f32 0.2, %v1215_v27  ;;  %vm1231_vm2 = vcmp.ge.f32.partialorder %v1215_v27, 0.0 }
 0x245   : > { %v4013_v6 = vpop.f32.mrf.mxu1 }
 0x246   : > { %v1246_v10 = vmul.f32 0.2, %v1214_v3  ;;  %v1134_v42 = vadd.f32 %v4045_v1, %v4013_v6  ;;  %vm1230_vm3 = vcmp.ge.f32.partialorder %v1214_v3, 0.0  ;;  %v1263_v37 = vsel %vm1231_vm2, %v1215_v27, %v1247_v5  ;;  %v4054_v16 = vpop.f32.mrf.mxu0 }
 0x247   : > { %v935_v15 = vpop.f32.mrf.mxu1 }
 0x248   : > { %v1217_v18 = vadd.f32 %v3534_v9, %v1134_v42  ;;  %v1129_v19 = vadd.f32 %v1128_v45, %v935_v15  ;;  %v1262_v22 = vsel %vm1230_vm3, %v1214_v3, %v1246_v10  ;;  %v1158_v54 = vpop.f32.mrf.mxu0  ;;  %v3542_v3 = vld [vmem:[%s5754_s6 + $0xd8] sm:$0xff]  ;;  %v3541_v42 = vld [vmem:[%s5754_s6 + $0xd0] sm:$0xff] }
 0x249   : > { %4072 = vmatprep.mubr.msk.f32.mxu1 %vm334_vm1, %v1262_v22 }
 0x24a   : > { %v1216_v25 = vadd.f32 %v3533_v20, %v1129_v19  ;;  %4073 = vmatmul.mubr.msk.f32.vlgmr.msra.gmra.mxu1 %vm334_vm1, %v1263_v37  ;;  %v1249_v32 = vmul.f32 0.2, %v1217_v18  ;;  %vm1233_vm5 = vcmp.ge.f32.partialorder %v1217_v18, 0.0 }
 0x24c   : > { %v1248_v53 = vmul.f32 0.2, %v1216_v25  ;;  %vm1232_vm4 = vcmp.ge.f32.partialorder %v1216_v25, 0.0  ;;  %v1265_v40 = vsel %vm1233_vm5, %v1217_v18, %v1249_v32 }
 0x24d   : > { %v4016_v33 = vpop.f32.mrf.mxu1 }
 0x24e   : > { %v1144_v12 = vadd.f32 %v4048_v31, %v4016_v33  ;;  %v1264_v63 = vsel %vm1232_vm4, %v1216_v25, %v1248_v53  ;;  %v4057_v61 = vpop.f32.mrf.mxu0  ;;  %v3544_v31 = vld [vmem:[%s5754_s6 + $0xe8] sm:$0xff] }
 0x24f   : > { %v945_v2 = vpop.f32.mrf.mxu1  ;;  %4075 = vmatprep.mubr.msk.f32.mxu1 %vm334_vm1, %v1264_v63 }
 0x250   : > { %v1219_v41 = vadd.f32 %v3536_v34, %v1144_v12  ;;  %v1139_v43 = vadd.f32 %v1138_v35, %v945_v2  ;;  %4076 = vmatmul.mubr.msk.f32.gmra.mxu1 %vm334_vm1, %v1265_v40  ;;  %v1168_v5 = vpop.f32.mrf.mxu0  ;;  %v1568_v34 = vpop.permute.xlu0 %1567  ;;  %v3543_v35 = vld [vmem:[%s5754_s6 + $0xe0] sm:$0xff] }
 0x251   : > { %v1566_v12 = vpop.permute.xlu1 %1565  ;;  %4096 = vmatprep.subr.mxu0 %v1568_v34 }
 0x252   : > { %v1218_v44 = vadd.f32 %v3535_v7, %v1139_v43  ;;  %v1251_v46 = vmul.f32 0.2, %v1219_v41  ;;  %vm1235_vm7 = vcmp.ge.f32.partialorder %v1219_v41, 0.0  ;;  %4097 = vmatpush3.msra.mxu0 %v1568_v34  ;;  %v3553_v34 = vld [vmem:[%s5754_s6 + $0x130] sm:$0xff] }
 0x253   : > { %4098 = vmatprep.subr.mxu0 %v1566_v12 }
 0x254   : > { %v1250_v11 = vmul.f32 0.2, %v1218_v44  ;;  %vm1234_vm6 = vcmp.ge.f32.partialorder %v1218_v44, 0.0  ;;  %v1267_v28 = vsel %vm1235_vm7, %v1219_v41, %v1251_v46  ;;  %4099 = vmatpush3.msra.mxu0 %v1566_v12 }
 0x255   : > { %v4019_v8 = vpop.f32.mrf.mxu1 }
 0x256   : > { %v1154_v48 = vadd.f32 %v4051_v57, %v4019_v8  ;;  %v1266_v23 = vsel %vm1234_vm6, %v1218_v44, %v1250_v11  ;;  %v4060_v18 = vpop.f32.mrf.mxu0  ;;  %v1564_v44 = vpop.permute.xlu1 %1563  ;;  %v3546_v8 = vld [vmem:[%s5754_s6 + $0xf8] sm:$0xff] }
 0x257   : > { %v955_v26 = vpop.f32.mrf.mxu1  ;;  %4078 = vmatprep.mubr.msk.f32.mxu1 %vm334_vm1, %v1266_v23  ;;  %4100 = vmatprep.subr.mxu0 %v1564_v44 }
 0x258   : > { %v1221_v50 = vadd.f32 %v3538_v47, %v1154_v48  ;;  %v1149_v51 = vadd.f32 %v1148_v38, %v955_v26  ;;  %4079 = vmatmul.mubr.msk.f32.gmra.mxu1 %vm334_vm1, %v1267_v28  ;;  %v1178_v32 = vpop.f32.mrf.mxu0  ;;  %4101 = vmatpush3.msra.mxu0 %v1564_v44  ;;  %v3545_v38 = vld [vmem:[%s5754_s6 + $0xf0] sm:$0xff] }
 0x25a   : > { %v1220_v39 = vadd.f32 %v3537_v49, %v1149_v51  ;;  %v1253_v52 = vmul.f32 0.2, %v1221_v50  ;;  %vm1237_vm9 = vcmp.ge.f32.partialorder %v1221_v50, 0.0  ;;  %v1562_v49 = vpop.permute.xlu1 %1561 }
 0x25b   : > { %4102 = vmatprep.subr.mxu0 %v1562_v49 }
 0x25c   : > { %v1252_v21 = vmul.f32 0.2, %v1220_v39  ;;  %vm1236_vm8 = vcmp.ge.f32.partialorder %v1220_v39, 0.0  ;;  %v1269_v17 = vsel %vm1237_vm9, %v1221_v50, %v1253_v52  ;;  %4103 = vmatpush3.msra.mxu0 %v1562_v49 }
 0x25d   : > { %v4022_v55 = vpop.f32.mrf.mxu1 }
 0x25e   : > { %v1164_v30 = vadd.f32 %v4054_v16, %v4022_v55  ;;  %v1268_v58 = vsel %vm1236_vm8, %v1220_v39, %v1252_v21  ;;  %v4063_v41 = vpop.f32.mrf.mxu0 }
 0x25f   : > { %v965_v13 = vpop.f32.mrf.mxu1  ;;  %4081 = vmatprep.mubr.msk.f32.mxu1 %vm334_vm1, %v1268_v58 }
 0x260   : > { %v1223_v59 = vadd.f32 %v3540_v56, %v1164_v30  ;;  %v1159_v60 = vadd.f32 %v1158_v54, %v965_v13  ;;  %4082 = vmatmul.mubr.msk.f32.gmra.mxu1 %vm334_vm1, %v1269_v17  ;;  %v1188_v47 = vpop.f32.mrf.mxu0  ;;  %v3548_v56 = vld [vmem:[%s5754_s6 + $0x108] sm:$0xff]  ;;  %v3547_v30 = vld [vmem:[%s5754_s6 + $0x100] sm:$0xff] }
 0x262   : > { %v1222_v62 = vadd.f32 %v3539_v14, %v1159_v60  ;;  %v1255_v27 = vmul.f32 0.2, %v1223_v59  ;;  %vm1239_vm11 = vcmp.ge.f32.partialorder %v1223_v59, 0.0 }
 0x264   : > { %v1254_v0 = vmul.f32 0.2, %v1222_v62  ;;  %vm1238_vm10 = vcmp.ge.f32.partialorder %v1222_v62, 0.0  ;;  %v1271_v45 = vsel %vm1239_vm11, %v1223_v59, %v1255_v27  ;;  %v3550_v59 = vld [vmem:[%s5754_s6 + $0x118] sm:$0xff] }
 0x265   : > { %v4025_v1 = vpop.f32.mrf.mxu1 }
 0x266   : > { %v1174_v6 = vadd.f32 %v4057_v61, %v4025_v1  ;;  %v1270_v9 = vsel %vm1238_vm10, %v1222_v62, %v1254_v0  ;;  %v3549_v62 = vld [vmem:[%s5754_s6 + $0x110] sm:$0xff] }
 0x267   : > { %v975_v10 = vpop.f32.mrf.mxu1  ;;  %4084 = vmatprep.mubr.msk.f32.mxu1 %vm334_vm1, %v1270_v9 }
 0x268   : > { %v1225_v15 = vadd.f32 %v3542_v3, %v1174_v6  ;;  %v1169_v20 = vadd.f32 %v1168_v5, %v975_v10  ;;  %4085 = vmatmul.mubr.msk.f32.gmra.mxu1 %vm334_vm1, %v1271_v45  ;;  %v3552_v10 = vld [vmem:[%s5754_s6 + $0x128] sm:$0xff] }
 0x26a   : > { %v1224_v19 = vadd.f32 %v3541_v42, %v1169_v20  ;;  %v1257_v22 = vmul.f32 0.2, %v1225_v15  ;;  %vm1241_vm13 = vcmp.ge.f32.partialorder %v1225_v15, 0.0  ;;  %v3551_v20 = vld [vmem:[%s5754_s6 + $0x120] sm:$0xff] }
 0x26c   : > { %v1256_v37 = vmul.f32 0.2, %v1224_v19  ;;  %vm1240_vm12 = vcmp.ge.f32.partialorder %v1224_v19, 0.0  ;;  %v1273_v2 = vsel %vm1241_vm13, %v1225_v15, %v1257_v22 }
 0x26d   : > { %v4028_v25 = vpop.f32.mrf.mxu1 }
 0x26e   : > { %v1184_v53 = vadd.f32 %v4060_v18, %v4028_v25  ;;  %v1272_v33 = vsel %vm1240_vm12, %v1224_v19, %v1256_v37 }
 0x26f   : > { %v985_v63 = vpop.f32.mrf.mxu1  ;;  %4087 = vmatprep.mubr.msk.f32.mxu1 %vm334_vm1, %v1272_v33 }
 0x270   : > { %v1227_v7 = vadd.f32 %v3544_v31, %v1184_v53  ;;  %v1179_v40 = vadd.f32 %v1178_v32, %v985_v63  ;;  %4088 = vmatmul.mubr.msk.f32.gmra.mxu1 %vm334_vm1, %v1273_v2  ;;  %v3554_v31 = vld [vmem:[%s5754_s6 + $0x138] sm:$0xff] }
 0x272   : > { %v1226_v43 = vadd.f32 %v3543_v35, %v1179_v40  ;;  %v1259_v57 = vmul.f32 0.2, %v1227_v7  ;;  %vm1243_vm15 = vcmp.ge.f32.partialorder %v1227_v7, 0.0  ;;  %v3556_v40 = vld [vmem:[%s5754_s6 + $0x148] sm:$0xff] }
 0x274   : > { %v1258_v46 = vmul.f32 0.2, %v1226_v43  ;;  %v4031_v11 = vpop.f32.mrf.mxu1  ;;  %vm1242_vm14 = vcmp.ge.f32.partialorder %v1226_v43, 0.0  ;;  %v1275_v51 = vsel %vm1243_vm15, %v1227_v7, %v1259_v57  ;;  %v3555_v57 = vld [vmem:[%s5754_s6 + $0x140] sm:$0xff] }
 0x275   : > { %v1194_v48 = vadd.f32 %v4063_v41, %v4031_v11 }
 0x276   : > { %v995_v23 = vpop.f32.mrf.mxu1  ;;  %v1274_v26 = vsel %vm1242_vm14, %v1226_v43, %v1258_v46 }
 0x277   : > { %v1229_v28 = vadd.f32 %v3546_v8, %v1194_v48  ;;  %v1189_v50 = vadd.f32 %v1188_v47, %v995_v23  ;;  %4090 = vmatprep.mubr.msk.f32.mxu1 %vm334_vm1, %v1274_v26  ;;  %v3558_v23 = vld [vmem:[%s5754_s6 + $0x158] sm:$0xff] }
 0x278   : > { %4091 = vmatmul.mubr.msk.f32.gmra.mxu1 %vm334_vm1, %v1275_v51 }
 0x279   : > { %v1228_v16 = vadd.f32 %v3545_v38, %v1189_v50  ;;  %v1261_v39 = vmul.f32 0.2, %v1229_v28  ;;  %vm1245_vm2 = vcmp.ge.f32.partialorder %v1229_v28, 0.0 }
 0x27b   : > { %v1260_v52 = vmul.f32 0.2, %v1228_v16  ;;  %vm1244_vm0 = vcmp.ge.f32.partialorder %v1228_v16, 0.0  ;;  %v1277_v55 = vsel %vm1245_vm2, %v1229_v28, %v1261_v39  ;;  %v3557_v28 = vld [vmem:[%s5754_s6 + $0x150] sm:$0xff] }
 0x27d   : > { %v1276_v21 = vsel %vm1244_vm0, %v1228_v16, %v1260_v52 }
 0x27e   : > { %4093 = vmatprep.mubr.msk.f32.mxu1 %vm334_vm1, %v1276_v21  ;;  %v3560_v21 = vld [vmem:[%s5754_s6 + $0x168] sm:$0xff] }
 0x27f   : > { %4094 = vmatmul.mubr.msk.f32.gmra.mxu1 %vm334_vm1, %v1277_v55 }
 0x30a   : > { %v4074_v54 = vpop.f32.mrf.mxu1 }
 0x30b   : > { %v1419_v58 = vadd.f32 %v4074_v54, %v3548_v56  ;;  %v1838_v56 = vpop.permute.xlu0 %1837  ;;  %v1836_v54 = vpop.permute.xlu1 %1835 }
 0x30c   : > { %v1413_v13 = vpop.f32.mrf.mxu1  ;;  %4128 = vmatprep.subr.mxu1 %v1838_v56 }
 0x30d   : > { %v1414_v14 = vadd.f32 %v3547_v30, %v1413_v13  ;;  %v1509_v17 = vmul.f32 0.2, %v1419_v58  ;;  %vm1493_vm3 = vcmp.ge.f32.partialorder %v1419_v58, 0.0  ;;  %v3559_v13 = vld [vmem:[%s5754_s6 + $0x160] sm:$0xff]  ;;  %4129 = vmatpush3.msra.mxu1 %v1838_v56 }
 0x30e   : > { %4130 = vmatprep.subr.mxu1 %v1836_v54 }
 0x30f   : > { %vm1492_vm4 = vcmp.ge.f32.partialorder %v1414_v14, 0.0  ;;  %v1508_v60 = vmul.f32 0.2, %v1414_v14  ;;  %v1525_v1 = vsel %vm1493_vm3, %v1419_v58, %v1509_v17  ;;  %4131 = vmatpush3.msra.mxu1 %v1836_v54 }
 0x310   : > { %v4077_v61 = vpop.f32.mrf.mxu1 }
 0x311   : > { %v1429_v27 = vadd.f32 %v4077_v61, %v3550_v59  ;;  %v1524_v0 = vsel %vm1492_vm4, %v1414_v14, %v1508_v60  ;;  %v1834_v60 = vpop.permute.xlu0 %1833  ;;  %v1832_v61 = vpop.permute.xlu1 %1831 }
 0x312   : > { %v1423_v3 = vpop.f32.mrf.mxu1  ;;  %4104 = vmatprep.mubr.msk.f32.mxu0 %vm334_vm1, %v1524_v0  ;;  %4132 = vmatprep.subr.mxu1 %v1834_v60  ;;  %v3562_v0 = vld [vmem:[%s5754_s6 + $0x178] sm:$0xff] }
 0x313   : > { %v1424_v5 = vadd.f32 %v3549_v62, %v1423_v3  ;;  %4105 = vmatmul.mubr.msk.f32.vlgmr.msra.gmra.mxu0 %vm334_vm1, %v1525_v1  ;;  %v1511_v6 = vmul.f32 0.2, %v1429_v27  ;;  %vm1495_vm5 = vcmp.ge.f32.partialorder %v1429_v27, 0.0  ;;  %4133 = vmatpush3.msra.mxu1 %v1834_v60  ;;  %v3590_v60 = vld [vmem:[%s5754_s6 + $0x1d8] sm:$0xff] }
 0x314   : > { %4134 = vmatprep.subr.mxu1 %v1832_v61 }
 0x315   : > { %vm1494_vm6 = vcmp.ge.f32.partialorder %v1424_v5, 0.0  ;;  %v1510_v9 = vmul.f32 0.2, %v1424_v5  ;;  %v1527_v15 = vsel %vm1495_vm5, %v1429_v27, %v1511_v6  ;;  %4135 = vmatpush3.msra.mxu1 %v1832_v61 }
 0x317   : > { %v1526_v42 = vsel %vm1494_vm6, %v1424_v5, %v1510_v9  ;;  %v3561_v5 = vld [vmem:[%s5754_s6 + $0x170] sm:$0xff] }
 0x318   : > { %v4080_v45 = vpop.f32.mrf.mxu1  ;;  %4107 = vmatprep.mubr.msk.f32.mxu0 %vm334_vm1, %v1526_v42 }
 0x319   : > { %v1439_v18 = vadd.f32 %v4080_v45, %v3552_v10  ;;  %4108 = vmatmul.mubr.msk.f32.gmra.mxu0 %vm334_vm1, %v1527_v15 }
 0x31a   : > { %v1433_v19 = vpop.f32.mrf.mxu1 }
 0x31b   : > { %v1434_v22 = vadd.f32 %v3551_v20, %v1433_v19  ;;  %v1513_v37 = vmul.f32 0.2, %v1439_v18  ;;  %vm1497_vm7 = vcmp.ge.f32.partialorder %v1439_v18, 0.0  ;;  %v3580_v19 = vld [vmem:[%s5754_s6 + $0x188] sm:$0xff] }
 0x31d   : > { %vm1496_vm8 = vcmp.ge.f32.partialorder %v1434_v22, 0.0  ;;  %v1512_v25 = vmul.f32 0.2, %v1434_v22  ;;  %v1529_v33 = vsel %vm1497_vm7, %v1439_v18, %v1513_v37  ;;  %v3579_v37 = vld [vmem:[%s5754_s6 + $0x180] sm:$0xff] }
 0x31f   : > { %v1528_v32 = vsel %vm1496_vm8, %v1434_v22, %v1512_v25 }
 0x320   : > { %v4083_v53 = vpop.f32.mrf.mxu1  ;;  %4110 = vmatprep.mubr.msk.f32.mxu0 %vm334_vm1, %v1528_v32 }
 0x321   : > { %v1449_v12 = vadd.f32 %v4083_v53, %v3554_v31  ;;  %4111 = vmatmul.mubr.msk.f32.gmra.mxu0 %vm334_vm1, %v1529_v33  ;;  %v3581_v53 = vld [vmem:[%s5754_s6 + $0x190] sm:$0xff] }
 0x322   : > { %v1443_v63 = vpop.f32.mrf.mxu1 }
 0x323   : > { %v1444_v35 = vadd.f32 %v3553_v34, %v1443_v63  ;;  %v1515_v2 = vmul.f32 0.2, %v1449_v12  ;;  %vm1499_vm9 = vcmp.ge.f32.partialorder %v1449_v12, 0.0 }
 0x325   : > { %vm1498_vm10 = vcmp.ge.f32.partialorder %v1444_v35, 0.0  ;;  %v1514_v7 = vmul.f32 0.2, %v1444_v35  ;;  %v1531_v44 = vsel %vm1499_vm9, %v1449_v12, %v1515_v2 }
 0x327   : > { %v1530_v41 = vsel %vm1498_vm10, %v1444_v35, %v1514_v7 }
 0x328   : > { %v4086_v43 = vpop.f32.mrf.mxu1  ;;  %4113 = vmatprep.mubr.msk.f32.mxu0 %vm334_vm1, %v1530_v41 }
 0x329   : > { %v1459_v46 = vadd.f32 %v4086_v43, %v3556_v40  ;;  %4114 = vmatmul.mubr.msk.f32.gmra.mxu0 %vm334_vm1, %v1531_v44  ;;  %v3584_v40 = vld [vmem:[%s5754_s6 + $0x1a8] sm:$0xff] }
 0x32a   : > { %v1453_v11 = vpop.f32.mrf.mxu1 }
 0x32b   : > { %v1454_v8 = vadd.f32 %v3555_v57, %v1453_v11  ;;  %v1517_v47 = vmul.f32 0.2, %v1459_v46  ;;  %vm1501_vm11 = vcmp.ge.f32.partialorder %v1459_v46, 0.0  ;;  %v3583_v57 = vld [vmem:[%s5754_s6 + $0x1a0] sm:$0xff] }
 0x32d   : > { %vm1500_vm12 = vcmp.ge.f32.partialorder %v1454_v8, 0.0  ;;  %v1516_v48 = vmul.f32 0.2, %v1454_v8  ;;  %v1533_v49 = vsel %vm1501_vm11, %v1459_v46, %v1517_v47 }
 0x32f   : > { %v1532_v38 = vsel %vm1500_vm12, %v1454_v8, %v1516_v48 }
 0x330   : > { %v4089_v26 = vpop.f32.mrf.mxu1  ;;  %4116 = vmatprep.mubr.msk.f32.mxu0 %vm334_vm1, %v1532_v38 }
 0x331   : > { %v1469_v50 = vadd.f32 %v4089_v26, %v3558_v23  ;;  %4117 = vmatmul.mubr.msk.f32.gmra.mxu0 %vm334_vm1, %v1533_v49  ;;  %v3586_v23 = vld [vmem:[%s5754_s6 + $0x1b8] sm:$0xff] }
 0x332   : > { %v1463_v51 = vpop.f32.mrf.mxu1 }
 0x333   : > { %v1464_v16 = vadd.f32 %v3557_v28, %v1463_v51  ;;  %v1519_v39 = vmul.f32 0.2, %v1469_v50  ;;  %vm1503_vm13 = vcmp.ge.f32.partialorder %v1469_v50, 0.0  ;;  %v3585_v28 = vld [vmem:[%s5754_s6 + $0x1b0] sm:$0xff] }
 0x335   : > { %vm1502_vm14 = vcmp.ge.f32.partialorder %v1464_v16, 0.0  ;;  %v1518_v52 = vmul.f32 0.2, %v1464_v16  ;;  %v1535_v58 = vsel %vm1503_vm13, %v1469_v50, %v1519_v39 }
 0x337   : > { %v1534_v55 = vsel %vm1502_vm14, %v1464_v16, %v1518_v52 }
 0x338   : > { %v4092_v30 = vpop.f32.mrf.mxu1  ;;  %4119 = vmatprep.mubr.msk.f32.mxu0 %vm334_vm1, %v1534_v55 }
 0x339   : > { %v1479_v14 = vadd.f32 %v4092_v30, %v3560_v21  ;;  %4120 = vmatmul.mubr.msk.f32.gmra.mxu0 %vm334_vm1, %v1535_v58  ;;  %v3588_v21 = vld [vmem:[%s5754_s6 + $0x1c8] sm:$0xff]  ;;  %v3587_v30 = vld [vmem:[%s5754_s6 + $0x1c0] sm:$0xff] }
 0x33a   : > { %v1473_v17 = vpop.f32.mrf.mxu1 }
 0x33b   : > { %v1474_v59 = vadd.f32 %v3559_v13, %v1473_v17  ;;  %v1521_v62 = vmul.f32 0.2, %v1479_v14  ;;  %vm1505_vm15 = vcmp.ge.f32.partialorder %v1479_v14, 0.0 }
 0x33d   : > { %vm1504_vm0 = vcmp.ge.f32.partialorder %v1474_v59, 0.0  ;;  %v1520_v27 = vmul.f32 0.2, %v1474_v59  ;;  %v1537_v9 = vsel %vm1505_vm15, %v1479_v14, %v1521_v62 }
 0x33f   : > { %v4095_v1 = vpop.f32.mrf.mxu1  ;;  %v1536_v3 = vsel %vm1504_vm0, %v1474_v59, %v1520_v27 }
 0x340   : > { %v1489_v6 = vadd.f32 %v4095_v1, %v3562_v0  ;;  %4122 = vmatprep.mubr.msk.f32.mxu0 %vm334_vm1, %v1536_v3  ;;  %v3589_v0 = vld [vmem:[%s5754_s6 + $0x1d0] sm:$0xff] }
 0x341   : > { %v1483_v10 = vpop.f32.mrf.mxu1  ;;  %4123 = vmatmul.mubr.msk.f32.gmra.mxu0 %vm334_vm1, %v1537_v9 }
 0x342   : > { %v1484_v42 = vadd.f32 %v3561_v5, %v1483_v10  ;;  %v1523_v45 = vmul.f32 0.2, %v1489_v6  ;;  %vm1507_vm2 = vcmp.ge.f32.partialorder %v1489_v6, 0.0  ;;  %v3592_v10 = vld [vmem:[%s5754_s6 + $0x1e8] sm:$0xff] }
 0x344   : > { %vm1506_vm3 = vcmp.ge.f32.partialorder %v1484_v42, 0.0  ;;  %v1522_v15 = vmul.f32 0.2, %v1484_v42  ;;  %v1539_v18 = vsel %vm1507_vm2, %v1489_v6, %v1523_v45  ;;  %v2108_v45 = vpop.permute.xlu0 %2107 }
 0x345   : > { %4160 = vmatprep.subr.mxu0 %v2108_v45 }
 0x346   : > { %v1538_v20 = vsel %vm1506_vm3, %v1484_v42, %v1522_v15  ;;  %v2106_v15 = vpop.permute.xlu1 %2105  ;;  %4161 = vmatpush3.msra.mxu0 %v2108_v45 }
 0x347   : > { %4125 = vmatprep.mubr.msk.f32.mxu0 %vm334_vm1, %v1538_v20  ;;  %4162 = vmatprep.subr.mxu0 %v2106_v15 }
 0x348   : > { %4126 = vmatmul.mubr.msk.f32.gmra.mxu0 %vm334_vm1, %v1539_v18 }
 0x349   : > { %4163 = vmatpush3.msra.mxu0 %v2106_v15  ;;  %v3620_v15 = vld [vmem:[%s5754_s6 + $0x248] sm:$0xff] }
 0x3d3   : > { %v4106_v22 = vpop.f32.mrf.mxu0 }
 0x3d4   : > { %v1693_v25 = vadd.f32 %v4106_v22, %v3580_v19  ;;  %v3591_v19 = vld [vmem:[%s5754_s6 + $0x1e0] sm:$0xff] }
 0x3d5   : > { %v1687_v29 = vpop.f32.mrf.mxu0 }
 0x3d6   : > { %v1688_v31 = vadd.f32 %v3579_v37, %v1687_v29  ;;  %v1783_v32 = vmul.f32 0.2, %v1693_v25  ;;  %vm1767_vm4 = vcmp.ge.f32.partialorder %v1693_v25, 0.0  ;;  %v2104_v29 = vpop.permute.xlu0 %2103 }
 0x3d7   : > { %4164 = vmatprep.subr.mxu0 %v2104_v29 }
 0x3d8   : > { %vm1766_vm5 = vcmp.ge.f32.partialorder %v1688_v31, 0.0  ;;  %v1782_v36 = vmul.f32 0.2, %v1688_v31  ;;  %v1799_v12 = vsel %vm1767_vm4, %v1693_v25, %v1783_v32  ;;  %4165 = vmatpush3.msra.mxu0 %v2104_v29 }
 0x3d9   : > { %v4109_v4 = vpop.f32.mrf.mxu0 }
 0x3da   : > { %v1703_v33 = vadd.f32 %v4109_v4, %v3582_v24  ;;  %v1798_v34 = vsel %vm1766_vm5, %v1688_v31, %v1782_v36  ;;  %v2102_v31 = vpop.permute.xlu1 %2101  ;;  %v3594_v36 = vld [vmem:[%s5754_s6 + $0x1f8] sm:$0xff] }
 0x3db   : > { %v1697_v63 = vpop.f32.mrf.mxu0  ;;  %4136 = vmatprep.mubr.msk.f32.mxu1 %vm334_vm1, %v1798_v34  ;;  %4166 = vmatprep.subr.mxu0 %v2102_v31 }
 0x3dc   : > { %v1698_v35 = vadd.f32 %v3581_v53, %v1697_v63  ;;  %4137 = vmatmul.mubr.msk.f32.vlgmr.msra.gmra.mxu1 %vm334_vm1, %v1799_v12  ;;  %v1785_v2 = vmul.f32 0.2, %v1703_v33  ;;  %vm1769_vm6 = vcmp.ge.f32.partialorder %v1703_v33, 0.0  ;;  %4167 = vmatpush3.msra.mxu0 %v2102_v31 }
 0x3de   : > { %vm1768_vm7 = vcmp.ge.f32.partialorder %v1698_v35, 0.0  ;;  %v1784_v7 = vmul.f32 0.2, %v1698_v35  ;;  %v1801_v44 = vsel %vm1769_vm6, %v1703_v33, %v1785_v2  ;;  %v3593_v33 = vld [vmem:[%s5754_s6 + $0x1f0] sm:$0xff] }
 0x3e0   : > { %v1800_v41 = vsel %vm1768_vm7, %v1698_v35, %v1784_v7 }
 0x3e1   : > { %v4112_v43 = vpop.f32.mrf.mxu0  ;;  %4139 = vmatprep.mubr.msk.f32.mxu1 %vm334_vm1, %v1800_v41 }
 0x3e2   : > { %v1713_v46 = vadd.f32 %v4112_v43, %v3584_v40  ;;  %4140 = vmatmul.mubr.msk.f32.gmra.mxu1 %vm334_vm1, %v1801_v44  ;;  %v2357_v43 = vld [vmem:[%s5753_s5 + $0x38] sm:$0xff]  ;;  %v5160_v44 = vld [vmem:[%s5753_s5 + $0x28] sm:$0xff] }
 0x3e3   : > { %v1707_v11 = vpop.f32.mrf.mxu0  ;;  %4192 = vmatprep.subr.mxu1 %v2357_v43  ;;  %2643 = vrot.lane.b32.xlu0 %v2357_v43, %s4458_s8 }
 0x3e4   : > { %v1708_v8 = vadd.f32 %v3583_v57, %v1707_v11  ;;  %v1787_v47 = vmul.f32 0.2, %v1713_v46  ;;  %vm1771_vm8 = vcmp.ge.f32.partialorder %v1713_v46, 0.0  ;;  %4193 = vmatpush3.msra.mxu1 %v2357_v43  ;;  %v2355_v57 = vld [vmem:[%s5753_s5 + $0x18] sm:$0xff]  ;;  %2641 = vrot.lane.b32.xlu1 %v5160_v44, %s4458_s8 }
 0x3e5   : > { %4194 = vmatprep.subr.mxu1 %v5160_v44 }
 0x3e6   : > { %vm1770_vm9 = vcmp.ge.f32.partialorder %v1708_v8, 0.0  ;;  %v1786_v48 = vmul.f32 0.2, %v1708_v8  ;;  %v1803_v49 = vsel %vm1771_vm8, %v1713_v46, %v1787_v47  ;;  %4195 = vmatpush3.msra.mxu1 %v5160_v44  ;;  %v3612_v46 = vld [vmem:[%s5754_s6 + $0x208] sm:$0xff] }
 0x3e7   : > { %4196 = vmatprep.subr.mxu1 %v2355_v57  ;;  %2639 = vrot.lane.b32.xlu0 %v2355_v57, %s4458_s8 }
 0x3e8   : > { %v1802_v38 = vsel %vm1770_vm9, %v1708_v8, %v1786_v48  ;;  %4197 = vmatpush3.msra.mxu1 %v2355_v57  ;;  %v3611_v8 = vld [vmem:[%s5754_s6 + $0x200] sm:$0xff] }
 0x3e9   : > { %v4115_v26 = vpop.f32.mrf.mxu0  ;;  %4142 = vmatprep.mubr.msk.f32.mxu1 %vm334_vm1, %v1802_v38 }
 0x3ea   : > { %v1723_v50 = vadd.f32 %v4115_v26, %v3586_v23  ;;  %4143 = vmatmul.mubr.msk.f32.gmra.mxu1 %vm334_vm1, %v1803_v49  ;;  %v3614_v26 = vld [vmem:[%s5754_s6 + $0x218] sm:$0xff] }
 0x3eb   : > { %v1717_v51 = vpop.f32.mrf.mxu0  ;;  %2913 = vrot.lane.b32.xlu0 %v2357_v43, %s4459_s17 }
 0x3ec   : > { %v1718_v16 = vadd.f32 %v3585_v28, %v1717_v51  ;;  %v1789_v39 = vmul.f32 0.2, %v1723_v50  ;;  %vm1773_vm10 = vcmp.ge.f32.partialorder %v1723_v50, 0.0 }
 0x3ee   : > { %vm1772_vm11 = vcmp.ge.f32.partialorder %v1718_v16, 0.0  ;;  %v1788_v52 = vmul.f32 0.2, %v1718_v16  ;;  %v1805_v54 = vsel %vm1773_vm10, %v1723_v50, %v1789_v39  ;;  %v3613_v50 = vld [vmem:[%s5754_s6 + $0x210] sm:$0xff] }
 0x3ef   : > { %2909 = vrot.lane.b32.xlu0 %v2355_v57, %s4459_s17  ;;  %v3623_v57 = vld [vmem:[%s5754_s6 + $0x260] sm:$0xff] }
 0x3f0   : > { %v1804_v55 = vsel %vm1772_vm11, %v1718_v16, %v1788_v52 }
 0x3f1   : > { %v4118_v56 = vpop.f32.mrf.mxu0  ;;  %4145 = vmatprep.mubr.msk.f32.mxu1 %vm334_vm1, %v1804_v55 }
 0x3f2   : > { %v1733_v58 = vadd.f32 %v4118_v56, %v3588_v21  ;;  %4146 = vmatmul.mubr.msk.f32.gmra.mxu1 %vm334_vm1, %v1805_v54  ;;  %v3616_v54 = vld [vmem:[%s5754_s6 + $0x228] sm:$0xff] }
 0x3f3   : > { %v1727_v13 = vpop.f32.mrf.mxu0 }
 0x3f4   : > { %v1728_v14 = vadd.f32 %v3587_v30, %v1727_v13  ;;  %v1791_v17 = vmul.f32 0.2, %v1733_v58  ;;  %vm1775_vm12 = vcmp.ge.f32.partialorder %v1733_v58, 0.0 }
 0x3f6   : > { %vm1774_vm13 = vcmp.ge.f32.partialorder %v1728_v14, 0.0  ;;  %v1790_v59 = vmul.f32 0.2, %v1728_v14  ;;  %v1807_v27 = vsel %vm1775_vm12, %v1733_v58, %v1791_v17 }
 0x3f8   : > { %v1806_v61 = vsel %vm1774_vm13, %v1728_v14, %v1790_v59  ;;  %v3615_v14 = vld [vmem:[%s5754_s6 + $0x220] sm:$0xff] }
 0x3f9   : > { %v4121_v62 = vpop.f32.mrf.mxu0  ;;  %4148 = vmatprep.mubr.msk.f32.mxu1 %vm334_vm1, %v1806_v61 }
 0x3fa   : > { %v1743_v1 = vadd.f32 %v4121_v62, %v3590_v60  ;;  %4149 = vmatmul.mubr.msk.f32.gmra.mxu1 %vm334_vm1, %v1807_v27  ;;  %v3618_v27 = vld [vmem:[%s5754_s6 + $0x238] sm:$0xff] }
 0x3fb   : > { %v1737_v3 = vpop.f32.mrf.mxu0 }
 0x3fc   : > { %v1738_v5 = vadd.f32 %v3589_v0, %v1737_v3  ;;  %v1793_v6 = vmul.f32 0.2, %v1743_v1  ;;  %vm1777_vm14 = vcmp.ge.f32.partialorder %v1743_v1, 0.0 }
 0x3fe   : > { %vm1776_vm15 = vcmp.ge.f32.partialorder %v1738_v5, 0.0  ;;  %v1792_v9 = vmul.f32 0.2, %v1738_v5  ;;  %v1809_v18 = vsel %vm1777_vm14, %v1743_v1, %v1793_v6 }
 0x400   : > { %v1808_v42 = vsel %vm1776_vm15, %v1738_v5, %v1792_v9  ;;  %v3617_v5 = vld [vmem:[%s5754_s6 + $0x230] sm:$0xff] }
 0x401   : > { %v4124_v20 = vpop.f32.mrf.mxu0  ;;  %4151 = vmatprep.mubr.msk.f32.mxu1 %vm334_vm1, %v1808_v42 }
 0x402   : > { %v1753_v22 = vadd.f32 %v4124_v20, %v3592_v10  ;;  %4152 = vmatmul.mubr.msk.f32.gmra.mxu1 %vm334_vm1, %v1809_v18 }
 0x403   : > { %v1747_v37 = vpop.f32.mrf.mxu0 }
 0x404   : > { %v1748_v25 = vadd.f32 %v3591_v19, %v1747_v37  ;;  %v1795_v32 = vmul.f32 0.2, %v1753_v22  ;;  %vm1779_vm0 = vcmp.ge.f32.partialorder %v1753_v22, 0.0 }
 0x406   : > { %vm1778_vm2 = vcmp.ge.f32.partialorder %v1748_v25, 0.0  ;;  %v1794_v24 = vmul.f32 0.2, %v1748_v25  ;;  %v1811_v12 = vsel %vm1779_vm0, %v1753_v22, %v1795_v32  ;;  %v3619_v22 = vld [vmem:[%s5754_s6 + $0x240] sm:$0xff] }
 0x408   : > { %v4127_v4 = vpop.f32.mrf.mxu0  ;;  %v1810_v53 = vsel %vm1778_vm2, %v1748_v25, %v1794_v24  ;;  %v3622_v24 = vld [vmem:[%s5754_s6 + $0x258] sm:$0xff] }
 0x409   : > { %v1763_v34 = vadd.f32 %v4127_v4, %v3594_v36  ;;  %4154 = vmatprep.mubr.msk.f32.mxu1 %vm334_vm1, %v1810_v53 }
 0x40a   : > { %v1757_v63 = vpop.f32.mrf.mxu0  ;;  %4155 = vmatmul.mubr.msk.f32.gmra.mxu1 %vm334_vm1, %v1811_v12 }
 0x40b   : > { %v1758_v35 = vadd.f32 %v3593_v33, %v1757_v63  ;;  %v1797_v2 = vmul.f32 0.2, %v1763_v34  ;;  %vm1781_vm3 = vcmp.ge.f32.partialorder %v1763_v34, 0.0  ;;  %v3621_v33 = vld [vmem:[%s5754_s6 + $0x250] sm:$0xff] }
 0x40d   : > { %vm1780_vm4 = vcmp.ge.f32.partialorder %v1758_v35, 0.0  ;;  %v1796_v7 = vmul.f32 0.2, %v1758_v35  ;;  %v1813_v41 = vsel %vm1781_vm3, %v1763_v34, %v1797_v2 }
 0x40f   : > { %v1812_v40 = vsel %vm1780_vm4, %v1758_v35, %v1796_v7  ;;  %v3624_v7 = vld [vmem:[%s5754_s6 + $0x268] sm:$0xff] }
 0x410   : > { %4157 = vmatprep.mubr.msk.f32.mxu1 %vm334_vm1, %v1812_v40 }
 0x411   : > { %4158 = vmatmul.mubr.msk.f32.gmra.mxu1 %vm334_vm1, %v1813_v41 }
 0x49c   : > { %v4138_v11 = vpop.f32.mrf.mxu1 }
 0x49d   : > { %v1963_v47 = vadd.f32 %v4138_v11, %v3612_v46 }
 0x49e   : > { %v1957_v48 = vpop.f32.mrf.mxu1 }
 0x49f   : > { %v1958_v23 = vadd.f32 %v3611_v8, %v1957_v48  ;;  %v2053_v38 = vmul.f32 0.2, %v1963_v47  ;;  %vm2037_vm5 = vcmp.ge.f32.partialorder %v1963_v47, 0.0 }
 0x4a1   : > { %vm2036_vm6 = vcmp.ge.f32.partialorder %v1958_v23, 0.0  ;;  %v2052_v49 = vmul.f32 0.2, %v1958_v23  ;;  %v2069_v39 = vsel %vm2037_vm5, %v1963_v47, %v2053_v38 }
 0x4a2   : > { %v4141_v28 = vpop.f32.mrf.mxu1 }
 0x4a3   : > { %v1973_v51 = vadd.f32 %v4141_v28, %v3614_v26  ;;  %v2068_v16 = vsel %vm2036_vm6, %v1958_v23, %v2052_v49  ;;  %v3626_v23 = vld [vmem:[%s5754_s6 + $0x278] sm:$0xff]  ;;  %v3625_v49 = vld [vmem:[%s5754_s6 + $0x270] sm:$0xff] }
 0x4a4   : > { %v1967_v52 = vpop.f32.mrf.mxu1  ;;  %4168 = vmatprep.mubr.msk.f32.mxu0 %vm334_vm1, %v2068_v16 }
 0x4a5   : > { %v1968_v21 = vadd.f32 %v3613_v50, %v1967_v52  ;;  %4169 = vmatmul.mubr.msk.f32.vlgmr.msra.gmra.mxu0 %vm334_vm1, %v2069_v39  ;;  %v2055_v55 = vmul.f32 0.2, %v1973_v51  ;;  %vm2039_vm7 = vcmp.ge.f32.partialorder %v1973_v51, 0.0 }
 0x4a7   : > { %vm2038_vm8 = vcmp.ge.f32.partialorder %v1968_v21, 0.0  ;;  %v2054_v56 = vmul.f32 0.2, %v1968_v21  ;;  %v2071_v13 = vsel %vm2039_vm7, %v1973_v51, %v2055_v55 }
 0x4a9   : > { %v2070_v30 = vsel %vm2038_vm8, %v1968_v21, %v2054_v56  ;;  %v2354_v56 = vld [vmem:[%s5753_s5 + $0x8] sm:$0xff] }
 0x4aa   : > { %v4144_v58 = vpop.f32.mrf.mxu1  ;;  %4171 = vmatprep.mubr.msk.f32.mxu0 %vm334_vm1, %v2070_v30  ;;  %4198 = vmatprep.subr.mxu1 %v2354_v56  ;;  %v2642_v30 = vpop.permute.xlu1 %2641 }
 0x4ab   : > { %v1983_v17 = vadd.f32 %v4144_v58, %v3616_v54  ;;  %4172 = vmatmul.mubr.msk.f32.gmra.mxu0 %vm334_vm1, %v2071_v13  ;;  %2637 = vrot.lane.b32.xlu1 %v2354_v56, %s4458_s8  ;;  %v2644_v54 = vpop.permute.xlu0 %2643 }
 0x4ac   : > { %v1977_v59 = vpop.f32.mrf.mxu1  ;;  %4199 = vmatpush3.msra.mxu1 %v2354_v56  ;;  %4224 = vmatprep.subr.mxu0 %v2644_v54 }
 0x4ad   : > { %v1978_v60 = vadd.f32 %v3615_v14, %v1977_v59  ;;  %v2057_v61 = vmul.f32 0.2, %v1983_v17  ;;  %vm2041_vm9 = vcmp.ge.f32.partialorder %v1983_v17, 0.0  ;;  %4225 = vmatpush3.msra.mxu0 %v2644_v54  ;;  %v3644_v14 = vld [vmem:[%s5754_s6 + $0x288] sm:$0xff] }
 0x4ae   : > { %4226 = vmatprep.subr.mxu0 %v2642_v30 }
 0x4af   : > { %vm2040_vm10 = vcmp.ge.f32.partialorder %v1978_v60, 0.0  ;;  %v2056_v62 = vmul.f32 0.2, %v1978_v60  ;;  %v2073_v3 = vsel %vm2041_vm9, %v1983_v17, %v2057_v61  ;;  %2911 = vrot.lane.b32.xlu1 %v5160_v44, %s4459_s17  ;;  %4227 = vmatpush3.msra.mxu0 %v2642_v30  ;;  %v2640_v58 = vpop.permute.xlu0 %2639  ;;  %v3643_v44 = vld [vmem:[%s5754_s6 + $0x280] sm:$0xff] }
 0x4b0   : > { %4228 = vmatprep.subr.mxu0 %v2640_v58 }
 0x4b1   : > { %v2072_v0 = vsel %vm2040_vm10, %v1978_v60, %v2056_v62  ;;  %4229 = vmatpush3.msra.mxu0 %v2640_v58  ;;  %v3655_v58 = vld [vmem:[%s5754_s6 + $0x2e0] sm:$0xff] }
 0x4b2   : > { %v4147_v1 = vpop.f32.mrf.mxu1  ;;  %4174 = vmatprep.mubr.msk.f32.mxu0 %vm334_vm1, %v2072_v0 }
 0x4b3   : > { %v1993_v6 = vadd.f32 %v4147_v1, %v3618_v27  ;;  %4175 = vmatmul.mubr.msk.f32.gmra.mxu0 %vm334_vm1, %v2073_v3  ;;  %2907 = vrot.lane.b32.xlu1 %v2354_v56, %s4459_s17  ;;  %v3646_v27 = vld [vmem:[%s5754_s6 + $0x298] sm:$0xff]  ;;  %v3645_v3 = vld [vmem:[%s5754_s6 + $0x290] sm:$0xff] }
 0x4b4   : > { %v1987_v9 = vpop.f32.mrf.mxu1 }
 0x4b5   : > { %v1988_v10 = vadd.f32 %v3617_v5, %v1987_v9  ;;  %v2059_v42 = vmul.f32 0.2, %v1993_v6  ;;  %vm2043_vm11 = vcmp.ge.f32.partialorder %v1993_v6, 0.0 }
 0x4b7   : > { %vm2042_vm12 = vcmp.ge.f32.partialorder %v1988_v10, 0.0  ;;  %v2058_v45 = vmul.f32 0.2, %v1988_v10  ;;  %v2075_v19 = vsel %vm2043_vm11, %v1993_v6, %v2059_v42 }
 0x4b9   : > { %v2074_v20 = vsel %vm2042_vm12, %v1988_v10, %v2058_v45 }
 0x4ba   : > { %v4150_v18 = vpop.f32.mrf.mxu1  ;;  %4177 = vmatprep.mubr.msk.f32.mxu0 %vm334_vm1, %v2074_v20  ;;  %v3648_v20 = vld [vmem:[%s5754_s6 + $0x2a8] sm:$0xff] }
 0x4bb   : > { %v2003_v37 = vadd.f32 %v4150_v18, %v3620_v15  ;;  %4178 = vmatmul.mubr.msk.f32.gmra.mxu0 %vm334_vm1, %v2075_v19 }
 0x4bc   : > { %v1997_v25 = vpop.f32.mrf.mxu1 }
 0x4bd   : > { %v1998_v29 = vadd.f32 %v3619_v22, %v1997_v25  ;;  %v2061_v31 = vmul.f32 0.2, %v2003_v37  ;;  %vm2045_vm13 = vcmp.ge.f32.partialorder %v2003_v37, 0.0 }
 0x4bf   : > { %vm2044_vm14 = vcmp.ge.f32.partialorder %v1998_v29, 0.0  ;;  %v2060_v32 = vmul.f32 0.2, %v1998_v29  ;;  %v2077_v53 = vsel %vm2045_vm13, %v2003_v37, %v2061_v31  ;;  %v3647_v37 = vld [vmem:[%s5754_s6 + $0x2a0] sm:$0xff] }
 0x4c1   : > { %v2076_v36 = vsel %vm2044_vm14, %v1998_v29, %v2060_v32 }
 0x4c2   : > { %v4153_v4 = vpop.f32.mrf.mxu1  ;;  %4180 = vmatprep.mubr.msk.f32.mxu0 %vm334_vm1, %v2076_v36  ;;  %v3650_v36 = vld [vmem:[%s5754_s6 + $0x2b8] sm:$0xff] }
 0x4c3   : > { %v2013_v34 = vadd.f32 %v4153_v4, %v3622_v24  ;;  %4181 = vmatmul.mubr.msk.f32.gmra.mxu0 %vm334_vm1, %v2077_v53 }
 0x4c4   : > { %v2007_v12 = vpop.f32.mrf.mxu1 }
 0x4c5   : > { %v2008_v63 = vadd.f32 %v3621_v33, %v2007_v12  ;;  %v2063_v35 = vmul.f32 0.2, %v2013_v34  ;;  %vm2047_vm15 = vcmp.ge.f32.partialorder %v2013_v34, 0.0 }
 0x4c7   : > { %vm2046_vm0 = vcmp.ge.f32.partialorder %v2008_v63, 0.0  ;;  %v2062_v2 = vmul.f32 0.2, %v2008_v63  ;;  %v2079_v43 = vsel %vm2047_vm15, %v2013_v34, %v2063_v35  ;;  %v3649_v34 = vld [vmem:[%s5754_s6 + $0x2b0] sm:$0xff] }
 0x4c9   : > { %v2078_v40 = vsel %vm2046_vm0, %v2008_v63, %v2062_v2 }
 0x4ca   : > { %v4156_v41 = vpop.f32.mrf.mxu1  ;;  %4183 = vmatprep.mubr.msk.f32.mxu0 %vm334_vm1, %v2078_v40  ;;  %v3652_v40 = vld [vmem:[%s5754_s6 + $0x2c8] sm:$0xff] }
 0x4cb   : > { %v2023_v46 = vadd.f32 %v4156_v41, %v3624_v7  ;;  %4184 = vmatmul.mubr.msk.f32.gmra.mxu0 %vm334_vm1, %v2079_v43 }
 0x4cc   : > { %v2017_v11 = vpop.f32.mrf.mxu1 }
 0x4cd   : > { %v2018_v8 = vadd.f32 %v3623_v57, %v2017_v11  ;;  %v2065_v47 = vmul.f32 0.2, %v2023_v46  ;;  %vm2049_vm2 = vcmp.ge.f32.partialorder %v2023_v46, 0.0 }
 0x4cf   : > { %vm2048_vm3 = vcmp.ge.f32.partialorder %v2018_v8, 0.0  ;;  %v2064_v48 = vmul.f32 0.2, %v2018_v8  ;;  %v2081_v50 = vsel %vm2049_vm2, %v2023_v46, %v2065_v47  ;;  %v3651_v46 = vld [vmem:[%s5754_s6 + $0x2c0] sm:$0xff] }
 0x4d1   : > { %v4159_v38 = vpop.f32.mrf.mxu1  ;;  %v2080_v26 = vsel %vm2048_vm3, %v2018_v8, %v2064_v48 }
 0x4d2   : > { %v2033_v28 = vadd.f32 %v4159_v38, %v3626_v23  ;;  %4186 = vmatprep.mubr.msk.f32.mxu0 %vm334_vm1, %v2080_v26  ;;  %v3654_v38 = vld [vmem:[%s5754_s6 + $0x2d8] sm:$0xff] }
 0x4d3   : > { %v2027_v51 = vpop.f32.mrf.mxu1  ;;  %4187 = vmatmul.mubr.msk.f32.gmra.mxu0 %vm334_vm1, %v2081_v50  ;;  %v3653_v50 = vld [vmem:[%s5754_s6 + $0x2d0] sm:$0xff] }
 0x4d4   : > { %v2028_v16 = vadd.f32 %v3625_v49, %v2027_v51  ;;  %v2067_v39 = vmul.f32 0.2, %v2033_v28  ;;  %vm2051_vm4 = vcmp.ge.f32.partialorder %v2033_v28, 0.0 }
 0x4d6   : > { %vm2050_vm5 = vcmp.ge.f32.partialorder %v2028_v16, 0.0  ;;  %v2066_v52 = vmul.f32 0.2, %v2028_v16  ;;  %v2083_v55 = vsel %vm2051_vm4, %v2033_v28, %v2067_v39 }
 0x4d8   : > { %v2082_v21 = vsel %vm2050_vm5, %v2028_v16, %v2066_v52 }
 0x4d9   : > { %4189 = vmatprep.mubr.msk.f32.mxu0 %vm334_vm1, %v2082_v21 }
 0x4da   : > { %4190 = vmatmul.mubr.msk.f32.gmra.mxu0 %vm334_vm1, %v2083_v55  ;;  %v3656_v55 = vld [vmem:[%s5754_s6 + $0x2e8] sm:$0xff] }
 0x51d   : > { %v2638_v13 = vpop.permute.xlu1 %2637 }
 0x51e   : > { %4230 = vmatprep.subr.mxu0 %v2638_v13 }
 0x51f   : > { %4231 = vmatpush3.msra.mxu0 %v2638_v13 }
 0x565   : > { %v4170_v17 = vpop.f32.mrf.mxu0 }
 0x566   : > { %v2233_v59 = vadd.f32 %v4170_v17, %v3644_v14 }
 0x567   : > { %v2227_v60 = vpop.f32.mrf.mxu0 }
 0x568   : > { %v2228_v61 = vadd.f32 %v3643_v44, %v2227_v60  ;;  %v2323_v62 = vmul.f32 0.2, %v2233_v59  ;;  %vm2307_vm6 = vcmp.ge.f32.partialorder %v2233_v59, 0.0  ;;  %v3658_v60 = vld [vmem:[%s5754_s6 + $0x2f8] sm:$0xff] }
 0x56a   : > { %vm2306_vm7 = vcmp.ge.f32.partialorder %v2228_v61, 0.0  ;;  %v2322_v0 = vmul.f32 0.2, %v2228_v61  ;;  %v2339_v9 = vsel %vm2307_vm6, %v2233_v59, %v2323_v62 }
 0x56b   : > { %v4173_v1 = vpop.f32.mrf.mxu0 }
 0x56c   : > { %v2243_v5 = vadd.f32 %v4173_v1, %v3646_v27  ;;  %v2338_v6 = vsel %vm2306_vm7, %v2228_v61, %v2322_v0  ;;  %v3657_v27 = vld [vmem:[%s5754_s6 + $0x2f0] sm:$0xff] }
 0x56d   : > { %v2237_v10 = vpop.f32.mrf.mxu0  ;;  %4200 = vmatprep.mubr.msk.f32.mxu1 %vm334_vm1, %v2338_v6 }
 0x56e   : > { %v2238_v42 = vadd.f32 %v3645_v3, %v2237_v10  ;;  %4201 = vmatmul.mubr.msk.f32.vlgmr.msra.gmra.mxu1 %vm334_vm1, %v2339_v9  ;;  %v2325_v45 = vmul.f32 0.2, %v2243_v5  ;;  %vm2309_vm8 = vcmp.ge.f32.partialorder %v2243_v5, 0.0 }
 0x570   : > { %vm2308_vm9 = vcmp.ge.f32.partialorder %v2238_v42, 0.0  ;;  %v2324_v15 = vmul.f32 0.2, %v2238_v42  ;;  %v2341_v22 = vsel %vm2309_vm8, %v2243_v5, %v2325_v45  ;;  %v2914_v45 = vpop.permute.xlu0 %2913 }
 0x571   : > { %4256 = vmatprep.subr.mxu1 %v2914_v45 }
 0x572   : > { %v2340_v18 = vsel %vm2308_vm9, %v2238_v42, %v2324_v15  ;;  %v2912_v15 = vpop.permute.xlu1 %2911  ;;  %4257 = vmatpush3.msra.mxu1 %v2914_v45 }
 0x573   : > { %v4176_v19 = vpop.f32.mrf.mxu0  ;;  %4203 = vmatprep.mubr.msk.f32.mxu1 %vm334_vm1, %v2340_v18  ;;  %4258 = vmatprep.subr.mxu1 %v2912_v15 }
 0x574   : > { %v2253_v25 = vadd.f32 %v4176_v19, %v3648_v20  ;;  %4204 = vmatmul.mubr.msk.f32.gmra.mxu1 %vm334_vm1, %v2341_v22  ;;  %v2910_v20 = vpop.permute.xlu0 %2909  ;;  %v3676_v19 = vld [vmem:[%s5754_s6 + $0x308] sm:$0xff] }
 0x575   : > { %v2247_v29 = vpop.f32.mrf.mxu0  ;;  %4259 = vmatpush3.msra.mxu1 %v2912_v15 }
 0x576   : > { %v2248_v31 = vadd.f32 %v3647_v37, %v2247_v29  ;;  %v2327_v32 = vmul.f32 0.2, %v2253_v25  ;;  %vm2311_vm10 = vcmp.ge.f32.partialorder %v2253_v25, 0.0  ;;  %v2908_v18 = vpop.permute.xlu1 %2907  ;;  %4260 = vmatprep.subr.mxu1 %v2910_v20  ;;  %v3675_v37 = vld [vmem:[%s5754_s6 + $0x300] sm:$0xff] }
 0x577   : > { %4261 = vmatpush3.msra.mxu1 %v2910_v20  ;;  %v3687_v20 = vld [vmem:[%s5754_s6 + $0x360] sm:$0xff] }
 0x578   : > { %vm2310_vm11 = vcmp.ge.f32.partialorder %v2248_v31, 0.0  ;;  %v2326_v24 = vmul.f32 0.2, %v2248_v31  ;;  %v2343_v33 = vsel %vm2311_vm10, %v2253_v25, %v2327_v32  ;;  %4262 = vmatprep.subr.mxu1 %v2908_v18 }
 0x579   : > { %4263 = vmatpush3.msra.mxu1 %v2908_v18 }
 0x57a   : > { %v2342_v4 = vsel %vm2310_vm11, %v2248_v31, %v2326_v24  ;;  %v3678_v24 = vld [vmem:[%s5754_s6 + $0x318] sm:$0xff] }
 0x57b   : > { %v4179_v53 = vpop.f32.mrf.mxu0  ;;  %4206 = vmatprep.mubr.msk.f32.mxu1 %vm334_vm1, %v2342_v4 }
 0x57c   : > { %v2263_v12 = vadd.f32 %v4179_v53, %v3650_v36  ;;  %4207 = vmatmul.mubr.msk.f32.gmra.mxu1 %vm334_vm1, %v2343_v33  ;;  %v3677_v53 = vld [vmem:[%s5754_s6 + $0x310] sm:$0xff] }
 0x57d   : > { %v2257_v63 = vpop.f32.mrf.mxu0 }
 0x57e   : > { %v2258_v35 = vadd.f32 %v3649_v34, %v2257_v63  ;;  %v2329_v2 = vmul.f32 0.2, %v2263_v12  ;;  %vm2313_vm12 = vcmp.ge.f32.partialorder %v2263_v12, 0.0 }
 0x580   : > { %vm2312_vm13 = vcmp.ge.f32.partialorder %v2258_v35, 0.0  ;;  %v2328_v7 = vmul.f32 0.2, %v2258_v35  ;;  %v2345_v57 = vsel %vm2313_vm12, %v2263_v12, %v2329_v2 }
 0x582   : > { %v2344_v41 = vsel %vm2312_vm13, %v2258_v35, %v2328_v7 }
 0x583   : > { %v4182_v43 = vpop.f32.mrf.mxu0  ;;  %4209 = vmatprep.mubr.msk.f32.mxu1 %vm334_vm1, %v2344_v41 }
 0x584   : > { %v2273_v11 = vadd.f32 %v4182_v43, %v3652_v40  ;;  %4210 = vmatmul.mubr.msk.f32.gmra.mxu1 %vm334_vm1, %v2345_v57  ;;  %v3680_v40 = vld [vmem:[%s5754_s6 + $0x328] sm:$0xff] }
 0x585   : > { %v2267_v8 = vpop.f32.mrf.mxu0 }
 0x586   : > { %v2268_v47 = vadd.f32 %v3651_v46, %v2267_v8  ;;  %v2331_v48 = vmul.f32 0.2, %v2273_v11  ;;  %vm2315_vm14 = vcmp.ge.f32.partialorder %v2273_v11, 0.0  ;;  %v3679_v46 = vld [vmem:[%s5754_s6 + $0x320] sm:$0xff] }
 0x588   : > { %vm2314_vm15 = vcmp.ge.f32.partialorder %v2268_v47, 0.0  ;;  %v2330_v23 = vmul.f32 0.2, %v2268_v47  ;;  %v2347_v28 = vsel %vm2315_vm14, %v2273_v11, %v2331_v48 }
 0x58a   : > { %v2346_v26 = vsel %vm2314_vm15, %v2268_v47, %v2330_v23 }
 0x58b   : > { %v4185_v49 = vpop.f32.mrf.mxu0  ;;  %4212 = vmatprep.mubr.msk.f32.mxu1 %vm334_vm1, %v2346_v26 }
 0x58c   : > { %v2283_v51 = vadd.f32 %v4185_v49, %v3654_v38  ;;  %4213 = vmatmul.mubr.msk.f32.gmra.mxu1 %vm334_vm1, %v2347_v28  ;;  %v3682_v38 = vld [vmem:[%s5754_s6 + $0x338] sm:$0xff] }
 0x58d   : > { %v2277_v16 = vpop.f32.mrf.mxu0 }
 0x58e   : > { %v2278_v39 = vadd.f32 %v3653_v50, %v2277_v16  ;;  %v2333_v52 = vmul.f32 0.2, %v2283_v51  ;;  %vm2317_vm0 = vcmp.ge.f32.partialorder %v2283_v51, 0.0  ;;  %v3681_v50 = vld [vmem:[%s5754_s6 + $0x330] sm:$0xff] }
 0x590   : > { %vm2316_vm2 = vcmp.ge.f32.partialorder %v2278_v39, 0.0  ;;  %v2332_v21 = vmul.f32 0.2, %v2278_v39  ;;  %v2349_v30 = vsel %vm2317_vm0, %v2283_v51, %v2333_v52 }
 0x592   : > { %v2348_v56 = vsel %vm2316_vm2, %v2278_v39, %v2332_v21 }
 0x593   : > { %v4188_v54 = vpop.f32.mrf.mxu0  ;;  %4215 = vmatprep.mubr.msk.f32.mxu1 %vm334_vm1, %v2348_v56 }
 0x594   : > { %v2293_v13 = vadd.f32 %v4188_v54, %v3656_v55  ;;  %4216 = vmatmul.mubr.msk.f32.gmra.mxu1 %vm334_vm1, %v2349_v30  ;;  %v3684_v55 = vld [vmem:[%s5754_s6 + $0x348] sm:$0xff] }
 0x595   : > { %v2287_v14 = vpop.f32.mrf.mxu0 }
 0x596   : > { %v2288_v17 = vadd.f32 %v3655_v58, %v2287_v14  ;;  %v2335_v44 = vmul.f32 0.2, %v2293_v13  ;;  %vm2319_vm3 = vcmp.ge.f32.partialorder %v2293_v13, 0.0  ;;  %v3683_v58 = vld [vmem:[%s5754_s6 + $0x340] sm:$0xff] }
 0x598   : > { %vm2318_vm4 = vcmp.ge.f32.partialorder %v2288_v17, 0.0  ;;  %v2334_v59 = vmul.f32 0.2, %v2288_v17  ;;  %v2351_v1 = vsel %vm2319_vm3, %v2293_v13, %v2335_v44 }
 0x59a   : > { %v4191_v61 = vpop.f32.mrf.mxu0  ;;  %v2350_v62 = vsel %vm2318_vm4, %v2288_v17, %v2334_v59 }
 0x59b   : > { %v2303_v0 = vadd.f32 %v4191_v61, %v3658_v60  ;;  %4218 = vmatprep.mubr.msk.f32.mxu1 %vm334_vm1, %v2350_v62  ;;  %v3686_v60 = vld [vmem:[%s5754_s6 + $0x358] sm:$0xff] }
 0x59c   : > { %v2297_v3 = vpop.f32.mrf.mxu0  ;;  %4219 = vmatmul.mubr.msk.f32.gmra.mxu1 %vm334_vm1, %v2351_v1 }
 0x59d   : > { %v2298_v5 = vadd.f32 %v3657_v27, %v2297_v3  ;;  %v2337_v6 = vmul.f32 0.2, %v2303_v0  ;;  %vm2321_vm5 = vcmp.ge.f32.partialorder %v2303_v0, 0.0 }
 0x59f   : > { %vm2320_vm6 = vcmp.ge.f32.partialorder %v2298_v5, 0.0  ;;  %v2336_v9 = vmul.f32 0.2, %v2298_v5  ;;  %v2353_v42 = vsel %vm2321_vm5, %v2303_v0, %v2337_v6  ;;  %v3685_v0 = vld [vmem:[%s5754_s6 + $0x350] sm:$0xff] }
 0x5a1   : > { %v2352_v10 = vsel %vm2320_vm6, %v2298_v5, %v2336_v9 }
 0x5a2   : > { %4221 = vmatprep.mubr.msk.f32.mxu1 %vm334_vm1, %v2352_v10  ;;  %v3688_v10 = vld [vmem:[%s5754_s6 + $0x368] sm:$0xff] }
 0x5a3   : > { %4222 = vmatmul.mubr.msk.f32.gmra.mxu1 %vm334_vm1, %v2353_v42 }
 0x62e   : > { %v4202_v22 = vpop.f32.mrf.mxu1 }
 0x62f   : > { %v2495_v25 = vadd.f32 %v4202_v22, %v3676_v19 }
 0x630   : > { %v2489_v29 = vpop.f32.mrf.mxu1 }
 0x631   : > { %v2490_v31 = vadd.f32 %v3675_v37, %v2489_v29  ;;  %v2585_v32 = vmul.f32 0.2, %v2495_v25  ;;  %vm2569_vm7 = vcmp.ge.f32.partialorder %v2495_v25, 0.0  ;;  %v3690_v29 = vld [vmem:[%s5754_s6 + $0x378] sm:$0xff] }
 0x633   : > { %vm2568_vm8 = vcmp.ge.f32.partialorder %v2490_v31, 0.0  ;;  %v2584_v36 = vmul.f32 0.2, %v2490_v31  ;;  %v2601_v12 = vsel %vm2569_vm7, %v2495_v25, %v2585_v32 }
 0x634   : > { %v4205_v4 = vpop.f32.mrf.mxu1 }
 0x635   : > { %v2505_v33 = vadd.f32 %v4205_v4, %v3678_v24  ;;  %v2600_v34 = vsel %vm2568_vm8, %v2490_v31, %v2584_v36  ;;  %v3689_v24 = vld [vmem:[%s5754_s6 + $0x370] sm:$0xff] }
 0x636   : > { %v2499_v63 = vpop.f32.mrf.mxu1  ;;  %4232 = vmatprep.mubr.msk.f32.mxu0 %vm334_vm1, %v2600_v34 }
 0x637   : > { %v2500_v35 = vadd.f32 %v3677_v53, %v2499_v63  ;;  %4233 = vmatmul.mubr.msk.f32.vlgmr.msra.gmra.mxu0 %vm334_vm1, %v2601_v12  ;;  %v2587_v2 = vmul.f32 0.2, %v2505_v33  ;;  %vm2571_vm9 = vcmp.ge.f32.partialorder %v2505_v33, 0.0 }
 0x639   : > { %vm2570_vm10 = vcmp.ge.f32.partialorder %v2500_v35, 0.0  ;;  %v2586_v7 = vmul.f32 0.2, %v2500_v35  ;;  %v2603_v57 = vsel %vm2571_vm9, %v2505_v33, %v2587_v2  ;;  %v3708_v2 = vld [vmem:[%s5754_s6 + $0x388] sm:$0xff] }
 0x63b   : > { %v2602_v41 = vsel %vm2570_vm10, %v2500_v35, %v2586_v7 }
 0x63c   : > { %v4208_v43 = vpop.f32.mrf.mxu1  ;;  %4235 = vmatprep.mubr.msk.f32.mxu0 %vm334_vm1, %v2602_v41 }
 0x63d   : > { %v2515_v11 = vadd.f32 %v4208_v43, %v3680_v40  ;;  %4236 = vmatmul.mubr.msk.f32.gmra.mxu0 %vm334_vm1, %v2603_v57  ;;  %v3707_v40 = vld [vmem:[%s5754_s6 + $0x380] sm:$0xff] }
 0x63e   : > { %v2509_v8 = vpop.f32.mrf.mxu1 }
 0x63f   : > { %v2510_v47 = vadd.f32 %v3679_v46, %v2509_v8  ;;  %v2589_v48 = vmul.f32 0.2, %v2515_v11  ;;  %vm2573_vm11 = vcmp.ge.f32.partialorder %v2515_v11, 0.0 }
 0x641   : > { %vm2572_vm12 = vcmp.ge.f32.partialorder %v2510_v47, 0.0  ;;  %v2588_v23 = vmul.f32 0.2, %v2510_v47  ;;  %v2605_v28 = vsel %vm2573_vm11, %v2515_v11, %v2589_v48  ;;  %v3710_v11 = vld [vmem:[%s5754_s6 + $0x398] sm:$0xff]  ;;  %v3709_v48 = vld [vmem:[%s5754_s6 + $0x390] sm:$0xff] }
 0x643   : > { %v2604_v26 = vsel %vm2572_vm12, %v2510_v47, %v2588_v23 }
 0x644   : > { %v4211_v49 = vpop.f32.mrf.mxu1  ;;  %4238 = vmatprep.mubr.msk.f32.mxu0 %vm334_vm1, %v2604_v26 }
 0x645   : > { %v2525_v51 = vadd.f32 %v4211_v49, %v3682_v38  ;;  %4239 = vmatmul.mubr.msk.f32.gmra.mxu0 %vm334_vm1, %v2605_v28 }
 0x646   : > { %v2519_v16 = vpop.f32.mrf.mxu1 }
 0x647   : > { %v2520_v39 = vadd.f32 %v3681_v50, %v2519_v16  ;;  %v2591_v52 = vmul.f32 0.2, %v2525_v51  ;;  %vm2575_vm13 = vcmp.ge.f32.partialorder %v2525_v51, 0.0  ;;  %v3712_v16 = vld [vmem:[%s5754_s6 + $0x3a8] sm:$0xff] }
 0x649   : > { %vm2574_vm14 = vcmp.ge.f32.partialorder %v2520_v39, 0.0  ;;  %v2590_v21 = vmul.f32 0.2, %v2520_v39  ;;  %v2607_v30 = vsel %vm2575_vm13, %v2525_v51, %v2591_v52 }
 0x64b   : > { %v2606_v56 = vsel %vm2574_vm14, %v2520_v39, %v2590_v21 }
 0x64c   : > { %v4214_v54 = vpop.f32.mrf.mxu1  ;;  %4241 = vmatprep.mubr.msk.f32.mxu0 %vm334_vm1, %v2606_v56 }
 0x64d   : > { %v2535_v13 = vadd.f32 %v4214_v54, %v3684_v55  ;;  %4242 = vmatmul.mubr.msk.f32.gmra.mxu0 %vm334_vm1, %v2607_v30  ;;  %v3711_v55 = vld [vmem:[%s5754_s6 + $0x3a0] sm:$0xff] }
 0x64e   : > { %v2529_v14 = vpop.f32.mrf.mxu1 }
 0x64f   : > { %v2530_v17 = vadd.f32 %v3683_v58, %v2529_v14  ;;  %v2593_v44 = vmul.f32 0.2, %v2535_v13  ;;  %vm2577_vm15 = vcmp.ge.f32.partialorder %v2535_v13, 0.0  ;;  %v3714_v14 = vld [vmem:[%s5754_s6 + $0x3b8] sm:$0xff] }
 0x651   : > { %vm2576_vm0 = vcmp.ge.f32.partialorder %v2530_v17, 0.0  ;;  %v2592_v59 = vmul.f32 0.2, %v2530_v17  ;;  %v2609_v27 = vsel %vm2577_vm15, %v2535_v13, %v2593_v44 }
 0x653   : > { %v2608_v61 = vsel %vm2576_vm0, %v2530_v17, %v2592_v59 }
 0x654   : > { %v4217_v62 = vpop.f32.mrf.mxu1  ;;  %4244 = vmatprep.mubr.msk.f32.mxu0 %vm334_vm1, %v2608_v61 }
 0x655   : > { %v2545_v1 = vadd.f32 %v4217_v62, %v3686_v60  ;;  %4245 = vmatmul.mubr.msk.f32.gmra.mxu0 %vm334_vm1, %v2609_v27  ;;  %v3713_v60 = vld [vmem:[%s5754_s6 + $0x3b0] sm:$0xff] }
 0x656   : > { %v2539_v3 = vpop.f32.mrf.mxu1 }
 0x657   : > { %v2540_v5 = vadd.f32 %v3685_v0, %v2539_v3  ;;  %v2595_v6 = vmul.f32 0.2, %v2545_v1  ;;  %vm2579_vm2 = vcmp.ge.f32.partialorder %v2545_v1, 0.0  ;;  %v3716_v3 = vld [vmem:[%s5754_s6 + $0x3c8] sm:$0xff] }
 0x659   : > { %vm2578_vm3 = vcmp.ge.f32.partialorder %v2540_v5, 0.0  ;;  %v2594_v9 = vmul.f32 0.2, %v2540_v5  ;;  %v2611_v15 = vsel %vm2579_vm2, %v2545_v1, %v2595_v6 }
 0x65b   : > { %v2610_v42 = vsel %vm2578_vm3, %v2540_v5, %v2594_v9 }
 0x65c   : > { %v4220_v45 = vpop.f32.mrf.mxu1  ;;  %4247 = vmatprep.mubr.msk.f32.mxu0 %vm334_vm1, %v2610_v42 }
 0x65d   : > { %v2555_v18 = vadd.f32 %v4220_v45, %v3688_v10  ;;  %4248 = vmatmul.mubr.msk.f32.gmra.mxu0 %vm334_vm1, %v2611_v15  ;;  %v3715_v10 = vld [vmem:[%s5754_s6 + $0x3c0] sm:$0xff] }
 0x65e   : > { %v2549_v19 = vpop.f32.mrf.mxu1 }
 0x65f   : > { %v2550_v22 = vadd.f32 %v3687_v20, %v2549_v19  ;;  %v2597_v37 = vmul.f32 0.2, %v2555_v18  ;;  %vm2581_vm4 = vcmp.ge.f32.partialorder %v2555_v18, 0.0  ;;  %v3718_v19 = vld [vmem:[%s5754_s6 + $0x3d8] sm:$0xff] }
 0x661   : > { %vm2580_vm5 = vcmp.ge.f32.partialorder %v2550_v22, 0.0  ;;  %v2596_v25 = vmul.f32 0.2, %v2550_v22  ;;  %v2613_v4 = vsel %vm2581_vm4, %v2555_v18, %v2597_v37 }
 0x663   : > { %v4223_v31 = vpop.f32.mrf.mxu1  ;;  %v2612_v32 = vsel %vm2580_vm5, %v2550_v22, %v2596_v25 }
 0x664   : > { %v2565_v36 = vadd.f32 %v4223_v31, %v3690_v29  ;;  %4250 = vmatprep.mubr.msk.f32.mxu0 %vm334_vm1, %v2612_v32  ;;  %v3717_v29 = vld [vmem:[%s5754_s6 + $0x3d0] sm:$0xff] }
 0x665   : > { %v2559_v53 = vpop.f32.mrf.mxu1  ;;  %4251 = vmatmul.mubr.msk.f32.gmra.mxu0 %vm334_vm1, %v2613_v4 }
 0x666   : > { %v2560_v33 = vadd.f32 %v3689_v24, %v2559_v53  ;;  %v2599_v34 = vmul.f32 0.2, %v2565_v36  ;;  %vm2583_vm6 = vcmp.ge.f32.partialorder %v2565_v36, 0.0  ;;  %v3720_v53 = vld [vmem:[%s5754_s6 + $0x3e8] sm:$0xff] }
 0x668   : > { %vm2582_vm7 = vcmp.ge.f32.partialorder %v2560_v33, 0.0  ;;  %v2598_v12 = vmul.f32 0.2, %v2560_v33  ;;  %v2615_v35 = vsel %vm2583_vm6, %v2565_v36, %v2599_v34 }
 0x66a   : > { %v2614_v63 = vsel %vm2582_vm7, %v2560_v33, %v2598_v12 }
 0x66b   : > { %4253 = vmatprep.mubr.msk.f32.mxu0 %vm334_vm1, %v2614_v63  ;;  %v3719_v63 = vld [vmem:[%s5754_s6 + $0x3e0] sm:$0xff] }
 0x66c   : > { %4254 = vmatmul.mubr.msk.f32.gmra.mxu0 %vm334_vm1, %v2615_v35 }
 0x6f7   : > { %v4234_v7 = vpop.f32.mrf.mxu0 }
 0x6f8   : > { %v2769_v41 = vadd.f32 %v4234_v7, %v3708_v2 }
 0x6f9   : > { %v2763_v43 = vpop.f32.mrf.mxu0 }
 0x6fa   : > { %v2764_v57 = vadd.f32 %v3707_v40, %v2763_v43  ;;  %v2859_v46 = vmul.f32 0.2, %v2769_v41  ;;  %vm2843_vm8 = vcmp.ge.f32.partialorder %v2769_v41, 0.0  ;;  %v3722_v43 = vld [vmem:[%s5754_s6 + $0x3f8] sm:$0xff] }
 0x6fc   : > { %vm2842_vm9 = vcmp.ge.f32.partialorder %v2764_v57, 0.0  ;;  %v2858_v8 = vmul.f32 0.2, %v2764_v57  ;;  %v2875_v26 = vsel %vm2843_vm8, %v2769_v41, %v2859_v46 }
 0x6fd   : > { %v4237_v47 = vpop.f32.mrf.mxu0 }
 0x6fe   : > { %v2779_v23 = vadd.f32 %v4237_v47, %v3710_v11  ;;  %v2874_v38 = vsel %vm2842_vm9, %v2764_v57, %v2858_v8  ;;  %v3721_v11 = vld [vmem:[%s5754_s6 + $0x3f0] sm:$0xff] }
 0x6ff   : > { %v2773_v49 = vpop.f32.mrf.mxu0  ;;  %4264 = vmatprep.mubr.msk.f32.mxu1 %vm334_vm1, %v2874_v38 }
 0x700   : > { %v2774_v28 = vadd.f32 %v3709_v48, %v2773_v49  ;;  %4265 = vmatmul.mubr.msk.f32.vlgmr.msra.gmra.mxu1 %vm334_vm1, %v2875_v26  ;;  %v2861_v50 = vmul.f32 0.2, %v2779_v23  ;;  %vm2845_vm10 = vcmp.ge.f32.partialorder %v2779_v23, 0.0 }
 0x702   : > { %vm2844_vm11 = vcmp.ge.f32.partialorder %v2774_v28, 0.0  ;;  %v2860_v51 = vmul.f32 0.2, %v2774_v28  ;;  %v2877_v21 = vsel %vm2845_vm10, %v2779_v23, %v2861_v50  ;;  %v3740_v50 = vld [vmem:[%s5754_s6 + $0x408] sm:$0xff] }
 0x704   : > { %v2876_v39 = vsel %vm2844_vm11, %v2774_v28, %v2860_v51 }
 0x705   : > { %v4240_v52 = vpop.f32.mrf.mxu0  ;;  %4267 = vmatprep.mubr.msk.f32.mxu1 %vm334_vm1, %v2876_v39 }
 0x706   : > { %v2789_v56 = vadd.f32 %v4240_v52, %v3712_v16  ;;  %4268 = vmatmul.mubr.msk.f32.gmra.mxu1 %vm334_vm1, %v2877_v21  ;;  %v3739_v16 = vld [vmem:[%s5754_s6 + $0x400] sm:$0xff] }
 0x707   : > { %v2783_v54 = vpop.f32.mrf.mxu0 }
 0x708   : > { %v2784_v30 = vadd.f32 %v3711_v55, %v2783_v54  ;;  %v2863_v58 = vmul.f32 0.2, %v2789_v56  ;;  %vm2847_vm12 = vcmp.ge.f32.partialorder %v2789_v56, 0.0 }
 0x70a   : > { %vm2846_vm13 = vcmp.ge.f32.partialorder %v2784_v30, 0.0  ;;  %v2862_v13 = vmul.f32 0.2, %v2784_v30  ;;  %v2879_v59 = vsel %vm2847_vm12, %v2789_v56, %v2863_v58 }
 0x70c   : > { %v2878_v17 = vsel %vm2846_vm13, %v2784_v30, %v2862_v13  ;;  %v3742_v30 = vld [vmem:[%s5754_s6 + $0x418] sm:$0xff] }
 0x70d   : > { %v4243_v44 = vpop.f32.mrf.mxu0  ;;  %4270 = vmatprep.mubr.msk.f32.mxu1 %vm334_vm1, %v2878_v17  ;;  %v3741_v17 = vld [vmem:[%s5754_s6 + $0x410] sm:$0xff] }
 0x70e   : > { %v2799_v61 = vadd.f32 %v4243_v44, %v3714_v14  ;;  %4271 = vmatmul.mubr.msk.f32.gmra.mxu1 %vm334_vm1, %v2879_v59 }
 0x70f   : > { %v2793_v62 = vpop.f32.mrf.mxu0 }
 0x710   : > { %v2794_v27 = vadd.f32 %v3713_v60, %v2793_v62  ;;  %v2865_v0 = vmul.f32 0.2, %v2799_v61  ;;  %vm2849_vm14 = vcmp.ge.f32.partialorder %v2799_v61, 0.0 }
 0x712   : > { %vm2848_vm15 = vcmp.ge.f32.partialorder %v2794_v27, 0.0  ;;  %v2864_v1 = vmul.f32 0.2, %v2794_v27  ;;  %v2881_v9 = vsel %vm2849_vm14, %v2799_v61, %v2865_v0  ;;  %v3744_v0 = vld [vmem:[%s5754_s6 + $0x428] sm:$0xff] }
 0x714   : > { %v2880_v5 = vsel %vm2848_vm15, %v2794_v27, %v2864_v1 }
 0x715   : > { %v4246_v6 = vpop.f32.mrf.mxu0  ;;  %4273 = vmatprep.mubr.msk.f32.mxu1 %vm334_vm1, %v2880_v5  ;;  %v3743_v5 = vld [vmem:[%s5754_s6 + $0x420] sm:$0xff] }
 0x716   : > { %v2809_v42 = vadd.f32 %v4246_v6, %v3716_v3  ;;  %4274 = vmatmul.mubr.msk.f32.gmra.mxu1 %vm334_vm1, %v2881_v9 }
 0x717   : > { %v2803_v45 = vpop.f32.mrf.mxu0 }
 0x718   : > { %v2804_v15 = vadd.f32 %v3715_v10, %v2803_v45  ;;  %v2867_v20 = vmul.f32 0.2, %v2809_v42  ;;  %vm2851_vm0 = vcmp.ge.f32.partialorder %v2809_v42, 0.0 }
 0x71a   : > { %vm2850_vm2 = vcmp.ge.f32.partialorder %v2804_v15, 0.0  ;;  %v2866_v18 = vmul.f32 0.2, %v2804_v15  ;;  %v2883_v25 = vsel %vm2851_vm0, %v2809_v42, %v2867_v20  ;;  %v3746_v20 = vld [vmem:[%s5754_s6 + $0x438] sm:$0xff] }
 0x71c   : > { %v2882_v22 = vsel %vm2850_vm2, %v2804_v15, %v2866_v18 }
 0x71d   : > { %v4249_v37 = vpop.f32.mrf.mxu0  ;;  %4276 = vmatprep.mubr.msk.f32.mxu1 %vm334_vm1, %v2882_v22  ;;  %v3745_v22 = vld [vmem:[%s5754_s6 + $0x430] sm:$0xff] }
 0x71e   : > { %v2819_v31 = vadd.f32 %v4249_v37, %v3718_v19  ;;  %4277 = vmatmul.mubr.msk.f32.gmra.mxu1 %vm334_vm1, %v2883_v25 }
 0x71f   : > { %v2813_v32 = vpop.f32.mrf.mxu0 }
 0x720   : > { %v2814_v24 = vadd.f32 %v3717_v29, %v2813_v32  ;;  %v2869_v36 = vmul.f32 0.2, %v2819_v31  ;;  %vm2853_vm3 = vcmp.ge.f32.partialorder %v2819_v31, 0.0 }
 0x722   : > { %vm2852_vm4 = vcmp.ge.f32.partialorder %v2814_v24, 0.0  ;;  %v2868_v4 = vmul.f32 0.2, %v2814_v24  ;;  %v2885_v12 = vsel %vm2853_vm3, %v2819_v31, %v2869_v36  ;;  %v3748_v36 = vld [vmem:[%s5754_s6 + $0x448] sm:$0xff] }
 0x724   : > { %v2884_v33 = vsel %vm2852_vm4, %v2814_v24, %v2868_v4 }
 0x725   : > { %v4252_v34 = vpop.f32.mrf.mxu0  ;;  %4279 = vmatprep.mubr.msk.f32.mxu1 %vm334_vm1, %v2884_v33  ;;  %v3747_v33 = vld [vmem:[%s5754_s6 + $0x440] sm:$0xff] }
 0x726   : > { %v2829_v35 = vadd.f32 %v4252_v34, %v3720_v53  ;;  %4280 = vmatmul.mubr.msk.f32.gmra.mxu1 %vm334_vm1, %v2885_v12 }
 0x727   : > { %v2823_v2 = vpop.f32.mrf.mxu0 }
 0x728   : > { %v2824_v7 = vadd.f32 %v3719_v63, %v2823_v2  ;;  %v2871_v40 = vmul.f32 0.2, %v2829_v35  ;;  %vm2855_vm5 = vcmp.ge.f32.partialorder %v2829_v35, 0.0 }
 0x72a   : > { %vm2854_vm6 = vcmp.ge.f32.partialorder %v2824_v7, 0.0  ;;  %v2870_v41 = vmul.f32 0.2, %v2824_v7  ;;  %v2887_v47 = vsel %vm2855_vm5, %v2829_v35, %v2871_v40  ;;  %v3750_v40 = vld [vmem:[%s5754_s6 + $0x458] sm:$0xff] }
 0x72c   : > { %v4255_v57 = vpop.f32.mrf.mxu0  ;;  %v2886_v46 = vsel %vm2854_vm6, %v2824_v7, %v2870_v41 }
 0x72d   : > { %v2839_v8 = vadd.f32 %v4255_v57, %v3722_v43  ;;  %4282 = vmatprep.mubr.msk.f32.mxu1 %vm334_vm1, %v2886_v46  ;;  %v3749_v57 = vld [vmem:[%s5754_s6 + $0x450] sm:$0xff] }
 0x72e   : > { %v2833_v48 = vpop.f32.mrf.mxu0  ;;  %4283 = vmatmul.mubr.msk.f32.gmra.mxu1 %vm334_vm1, %v2887_v47 }
 0x72f   : > { %v2834_v23 = vadd.f32 %v3721_v11, %v2833_v48  ;;  %v2873_v38 = vmul.f32 0.2, %v2839_v8  ;;  %vm2857_vm7 = vcmp.ge.f32.partialorder %v2839_v8, 0.0 }
 0x731   : > { %vm2856_vm8 = vcmp.ge.f32.partialorder %v2834_v23, 0.0  ;;  %v2872_v26 = vmul.f32 0.2, %v2834_v23  ;;  %v2889_v28 = vsel %vm2857_vm7, %v2839_v8, %v2873_v38  ;;  %v3752_v38 = vld [vmem:[%s5754_s6 + $0x468] sm:$0xff] }
 0x733   : > { %v2888_v49 = vsel %vm2856_vm8, %v2834_v23, %v2872_v26 }
 0x734   : > { %4285 = vmatprep.mubr.msk.f32.mxu1 %vm334_vm1, %v2888_v49 }
 0x735   : > { %4286 = vmatmul.mubr.msk.f32.gmra.mxu1 %vm334_vm1, %v2889_v28  ;;  %v3751_v28 = vld [vmem:[%s5754_s6 + $0x460] sm:$0xff] }
 0x7c0   : > { %v4266_v51 = vpop.f32.mrf.mxu1 }
 0x7c1   : > { %v3039_v39 = vadd.f32 %v4266_v51, %v3740_v50 }
 0x7c2   : > { %v3033_v52 = vpop.f32.mrf.mxu1 }
 0x7c3   : > { %vm3113_vm9 = vcmp.ge.f32.partialorder %v3039_v39, 0.0  ;;  %v3129_v21 = vmul.f32 0.2, %v3039_v39  ;;  %v3034_v55 = vadd.f32 %v3739_v16, %v3033_v52 }
 0x7c5   : > { %vm3112_vm10 = vcmp.ge.f32.partialorder %v3034_v55, 0.0  ;;  %v3128_v56 = vmul.f32 0.2, %v3034_v55  ;;  %v5442_v54 = vsel %vm3113_vm9, %v3039_v39, %v3129_v21 }
 0x7c6   : > { %3178 = vrot.lane.b32.xlu1 %v5442_v54, %s4460_s14  ;;  %v4269_v58 = vpop.f32.mrf.mxu1 }
 0x7c7   : > { %v5449_v13 = vsel %vm3112_vm10, %v3034_v55, %v3128_v56  ;;  %v3049_v44 = vadd.f32 %v4269_v58, %v3742_v30  ;;  %v3754_v55 = vld [vmem:[%s5754_s6 + $0x478] sm:$0xff]  ;;  %v3753_v58 = vld [vmem:[%s5754_s6 + $0x470] sm:$0xff]  ;;  %vm3336_vm10 = vcmask 523264  }
 0x7c8   : > { %v3043_v14 = vpop.f32.mrf.mxu1  ;;  %3176 = vrot.lane.b32.xlu0 %v5449_v13, %s4460_s14 }
 0x7c9   : > { %v3044_v59 = vadd.f32 %v3741_v17, %v3043_v14  ;;  %v3131_v60 = vmul.f32 0.2, %v3049_v44  ;;  %vm3115_vm11 = vcmp.ge.f32.partialorder %v3049_v44, 0.0 }
 0x7ca   : > { %3226 = vrot.lane.b32.xlu1 %v5442_v54, %s4459_s17 }
 0x7cb   : > { %v3130_v61 = vmul.f32 0.2, %v3044_v59  ;;  %vm3114_vm12 = vcmp.ge.f32.partialorder %v3044_v59, 0.0  ;;  %v5464_v27 = vsel %vm3115_vm11, %v3049_v44, %v3131_v60  ;;  %vm3353_vm11 = vcmask 785408  }
 0x7cc   : > { %3224 = vrot.lane.b32.xlu0 %v5449_v13, %s4459_s17 }
 0x7cd   : > { %v5471_v1 = vsel %vm3114_vm12, %v3044_v59, %v3130_v61 }
 0x7ce   : > { %3274 = vrot.lane.b32.xlu1 %v5442_v54, %s4458_s8  ;;  %v4272_v62 = vpop.f32.mrf.mxu1 }
 0x7cf   : > { %v3059_v6 = vadd.f32 %v4272_v62, %v3744_v0 }
 0x7d0   : > { %3272 = vrot.lane.b32.xlu0 %v5449_v13, %s4458_s8  ;;  %v3053_v3 = vpop.f32.mrf.mxu1 }
 0x7d1   : > { %v3054_v9 = vadd.f32 %v3743_v5, %v3053_v3  ;;  %v3133_v10 = vmul.f32 0.2, %v3059_v6  ;;  %vm3117_vm13 = vcmp.ge.f32.partialorder %v3059_v6, 0.0 }
 0x7d2   : > { %3182 = vrot.lane.b32.xlu1 %v5464_v27, %s4460_s14 }
 0x7d3   : > { %v3132_v42 = vmul.f32 0.2, %v3054_v9  ;;  %vm3116_vm14 = vcmp.ge.f32.partialorder %v3054_v9, 0.0  ;;  %v5486_v15 = vsel %vm3117_vm13, %v3059_v6, %v3133_v10 }
 0x7d4   : > { %3180 = vrot.lane.b32.xlu0 %v5471_v1, %s4460_s14 }
 0x7d5   : > { %v5493_v18 = vsel %vm3116_vm14, %v3054_v9, %v3132_v42 }
 0x7d6   : > { %3230 = vrot.lane.b32.xlu1 %v5464_v27, %s4459_s17  ;;  %v4275_v45 = vpop.f32.mrf.mxu1 }
 0x7d7   : > { %v3069_v37 = vadd.f32 %v4275_v45, %v3746_v20 }
 0x7d8   : > { %3228 = vrot.lane.b32.xlu0 %v5471_v1, %s4459_s17  ;;  %v3063_v19 = vpop.f32.mrf.mxu1 }
 0x7d9   : > { %v3064_v25 = vadd.f32 %v3745_v22, %v3063_v19  ;;  %v3135_v29 = vmul.f32 0.2, %v3069_v37  ;;  %vm3119_vm15 = vcmp.ge.f32.partialorder %v3069_v37, 0.0 }
 0x7da   : > { %3278 = vrot.lane.b32.xlu1 %v5464_v27, %s4458_s8 }
 0x7db   : > { %v3134_v31 = vmul.f32 0.2, %v3064_v25  ;;  %vm3118_vm0 = vcmp.ge.f32.partialorder %v3064_v25, 0.0  ;;  %v5508_v24 = vsel %vm3119_vm15, %v3069_v37, %v3135_v29 }
 0x7dc   : > { %3276 = vrot.lane.b32.xlu0 %v5471_v1, %s4458_s8 }
 0x7dd   : > { %v5515_v4 = vsel %vm3118_vm0, %v3064_v25, %v3134_v31 }
 0x7de   : > { %3186 = vrot.lane.b32.xlu1 %v5486_v15, %s4460_s14  ;;  %v4278_v32 = vpop.f32.mrf.mxu1 }
 0x7df   : > { %v3079_v34 = vadd.f32 %v4278_v32, %v3748_v36 }
 0x7e0   : > { %3184 = vrot.lane.b32.xlu0 %v5493_v18, %s4460_s14  ;;  %v3073_v53 = vpop.f32.mrf.mxu1 }
 0x7e1   : > { %v3074_v12 = vadd.f32 %v3747_v33, %v3073_v53  ;;  %v3137_v63 = vmul.f32 0.2, %v3079_v34  ;;  %vm3121_vm2 = vcmp.ge.f32.partialorder %v3079_v34, 0.0 }
 0x7e2   : > { %3234 = vrot.lane.b32.xlu1 %v5486_v15, %s4459_s17 }
 0x7e3   : > { %v3136_v35 = vmul.f32 0.2, %v3074_v12  ;;  %vm3120_vm3 = vcmp.ge.f32.partialorder %v3074_v12, 0.0  ;;  %v5530_v7 = vsel %vm3121_vm2, %v3079_v34, %v3137_v63 }
 0x7e4   : > { %3232 = vrot.lane.b32.xlu0 %v5493_v18, %s4459_s17 }
 0x7e5   : > { %v5537_v41 = vsel %vm3120_vm3, %v3074_v12, %v3136_v35 }
 0x7e6   : > { %3282 = vrot.lane.b32.xlu1 %v5486_v15, %s4458_s8  ;;  %v4281_v2 = vpop.f32.mrf.mxu1 }
 0x7e7   : > { %v3089_v46 = vadd.f32 %v4281_v2, %v3750_v40 }
 0x7e8   : > { %3280 = vrot.lane.b32.xlu0 %v5493_v18, %s4458_s8  ;;  %v3083_v43 = vpop.f32.mrf.mxu1 }
 0x7e9   : > { %v3084_v11 = vadd.f32 %v3749_v57, %v3083_v43  ;;  %v3139_v8 = vmul.f32 0.2, %v3089_v46  ;;  %vm3123_vm4 = vcmp.ge.f32.partialorder %v3089_v46, 0.0 }
 0x7ea   : > { %3190 = vrot.lane.b32.xlu1 %v5508_v24, %s4460_s14 }
 0x7eb   : > { %v3138_v47 = vmul.f32 0.2, %v3084_v11  ;;  %vm3122_vm5 = vcmp.ge.f32.partialorder %v3084_v11, 0.0  ;;  %v5552_v23 = vsel %vm3123_vm4, %v3089_v46, %v3139_v8 }
 0x7ec   : > { %3188 = vrot.lane.b32.xlu0 %v5515_v4, %s4460_s14 }
 0x7ed   : > { %v5559_v26 = vsel %vm3122_vm5, %v3084_v11, %v3138_v47 }
 0x7ee   : > { %3238 = vrot.lane.b32.xlu1 %v5508_v24, %s4459_s17  ;;  %v4284_v48 = vpop.f32.mrf.mxu1 }
 0x7ef   : > { %v3099_v50 = vadd.f32 %v4284_v48, %v3752_v38 }
 0x7f0   : > { %3236 = vrot.lane.b32.xlu0 %v5515_v4, %s4459_s17  ;;  %v3093_v49 = vpop.f32.mrf.mxu1 }
 0x7f1   : > { %v3094_v51 = vadd.f32 %v3751_v28, %v3093_v49  ;;  %v3141_v16 = vmul.f32 0.2, %v3099_v50  ;;  %vm3125_vm6 = vcmp.ge.f32.partialorder %v3099_v50, 0.0 }
 0x7f2   : > { %3286 = vrot.lane.b32.xlu1 %v5508_v24, %s4458_s8 }
 0x7f3   : > { %v3140_v39 = vmul.f32 0.2, %v3094_v51  ;;  %vm3124_vm7 = vcmp.ge.f32.partialorder %v3094_v51, 0.0  ;;  %v5574_v21 = vsel %vm3125_vm6, %v3099_v50, %v3141_v16 }
 0x7f4   : > { %3284 = vrot.lane.b32.xlu0 %v5515_v4, %s4458_s8 }
 0x7f5   : > { %v4287_v52 = vpop.f32.mrf.mxu1  ;;  %v5581_v56 = vsel %vm3124_vm7, %v3094_v51, %v3140_v39 }
 0x7f6   : > { %3194 = vrot.lane.b32.xlu1 %v5530_v7, %s4460_s14  ;;  %v3109_v14 = vadd.f32 %v4287_v52, %v3754_v55 }
 0x7f7   : > { %v3103_v30 = vpop.f32.mrf.mxu1 }
 0x7f8   : > { %3192 = vrot.lane.b32.xlu0 %v5537_v41, %s4460_s14  ;;  %v3104_v17 = vadd.f32 %v3753_v58, %v3103_v30  ;;  %v3143_v44 = vmul.f32 0.2, %v3109_v14  ;;  %vm3127_vm8 = vcmp.ge.f32.partialorder %v3109_v14, 0.0 }
 0x7fa   : > { %3242 = vrot.lane.b32.xlu1 %v5530_v7, %s4459_s17  ;;  %v3142_v59 = vmul.f32 0.2, %v3104_v17  ;;  %vm3126_vm9 = vcmp.ge.f32.partialorder %v3104_v17, 0.0  ;;  %v5596_v60 = vsel %vm3127_vm8, %v3109_v14, %v3143_v44 }
 0x7fc   : > { %3240 = vrot.lane.b32.xlu0 %v5537_v41, %s4459_s17  ;;  %v5600_v61 = vsel %vm3126_vm9, %v3104_v17, %v3142_v59 }
 0x7fe   : > { %3290 = vrot.lane.b32.xlu1 %v5530_v7, %s4458_s8 }
 0x800   : > { %3288 = vrot.lane.b32.xlu0 %v5537_v41, %s4458_s8 }
 0x802   : > { %3198 = vrot.lane.b32.xlu1 %v5552_v23, %s4460_s14 }
 0x804   : > { %3196 = vrot.lane.b32.xlu0 %v5559_v26, %s4460_s14 }
 0x806   : > { %3246 = vrot.lane.b32.xlu1 %v5552_v23, %s4459_s17 }
 0x808   : > { %3244 = vrot.lane.b32.xlu0 %v5559_v26, %s4459_s17 }
 0x80a   : > { %3294 = vrot.lane.b32.xlu1 %v5552_v23, %s4458_s8 }
 0x80c   : > { %3292 = vrot.lane.b32.xlu0 %v5559_v26, %s4458_s8 }
 0x80e   : > { %3202 = vrot.lane.b32.xlu1 %v5574_v21, %s4460_s14 }
 0x810   : > { %3200 = vrot.lane.b32.xlu0 %v5581_v56, %s4460_s14 }
 0x812   : > { %3250 = vrot.lane.b32.xlu1 %v5574_v21, %s4459_s17 }
 0x814   : > { %3248 = vrot.lane.b32.xlu0 %v5581_v56, %s4459_s17 }
 0x816   : > { %3298 = vrot.lane.b32.xlu1 %v5574_v21, %s4458_s8 }
 0x818   : > { %3296 = vrot.lane.b32.xlu0 %v5581_v56, %s4458_s8 }
 0x81a   : > { %3206 = vrot.lane.b32.xlu1 %v5596_v60, %s4460_s14 }
 0x81c   : > { %3204 = vrot.lane.b32.xlu0 %v5600_v61, %s4460_s14 }
 0x81e   : > { %3254 = vrot.lane.b32.xlu1 %v5596_v60, %s4459_s17 }
 0x820   : > { %3252 = vrot.lane.b32.xlu0 %v5600_v61, %s4459_s17  ;;  %s3776_s17 = sshll.u32 %s4525_s28, 11  ;;  %s5708_s28 = scalar_lea.sflag [#allocation3], %s286_s16 }
 0x821   : > { %s5698_s21 = scalar_lea.hbm %s5755_s7, %s3776_s17 }
 0x822   : > { %3302 = vrot.lane.b32.xlu1 %v5596_v60, %s4458_s8 }
 0x824   : > { %3300 = vrot.lane.b32.xlu0 %v5600_v61, %s4458_s8  ;;  %s5622_s8 = scalar_lea.vmem [#allocation2], %s3478_s18 }
 0x825   : > { %s3400_s14 = sshll.u32 %s5622_s8, 4  ;;  %s5700_s14 = int_to_ptr.vmem [resolvable:$true] %s3400_s14 }
 0x826   : > { %s4396_s23 = scalar_lea.vmem %s5700_s14, 2048  ;;  %p4403_p0 = scmp.lt.s32.totalorder %s5700_s14, %s4401_s9 }
 0x827   : > { %p4397_p11 = scmp.ne.s32.totalorder %s5700_s14, %s4396_s23  ;;  %p4404_p1 = scmp.lt.s32.totalorder %s4402_s13, %s4396_s23 }
 0x829   : > { %p4398_p12 = pnand %p4397_p11, %p4542_p5  ;;  %p4405_p2 = por %p4404_p1, %p4403_p0 }
 0x82b   : > { %p4399_p13 = pneg %p4398_p12 }
 0x82d   : > { %p4406_p3 = pnand %p4405_p2, %p4399_p13 }
 0x838   : > { %v3179_v62 = vpop.permute.xlu1 %3178 }
 0x839   : > { %v3321_v6 = vsel %vm334_vm1, %v5442_v54, %v3179_v62 }
 0x83a   : > { %v3177_v0 = vpop.permute.xlu0 %3176 }
 0x83b   : > { %v3320_v42 = vsel %vm334_vm1, %v5449_v13, %v3177_v0 }
 0x83c   : > { %v3227_v3 = vpop.permute.xlu1 %3226 }
 0x83d   : > { %v3338_v9 = vsel %vm3336_vm10, %v3321_v6, %v3227_v3 }
 0x83e   : > { %v3225_v5 = vpop.permute.xlu0 %3224 }
 0x83f   : > { %v3337_v20 = vsel %vm3336_vm10, %v3320_v42, %v3225_v5 }
 0x840   : > { %v3275_v10 = vpop.permute.xlu1 %3274 }
 0x841   : > { %v3355_v45 = vsel %vm3353_vm11, %v3338_v9, %v3275_v10 }
 0x842   : > { %3371 = vst [vmem:[%s5622_s8 + $0x8] sm:$0xff] %v3355_v45  ;;  %v3273_v19 = vpop.permute.xlu0 %3272 }
 0x843   : > { %v3354_v54 = vsel %vm3353_vm11, %v3337_v20, %v3273_v19 }
 0x844   : > { %3370 = vst [vmem:[%s5622_s8] sm:$0xff] %v3354_v54  ;;  %v3183_v22 = vpop.permute.xlu1 %3182 }
 0x845   : > { %v3323_v13 = vsel %vm334_vm1, %v5464_v27, %v3183_v22 }
 0x846   : > { %v3181_v37 = vpop.permute.xlu0 %3180 }
 0x847   : > { %v3322_v36 = vsel %vm334_vm1, %v5471_v1, %v3181_v37 }
 0x848   : > { %v3231_v25 = vpop.permute.xlu1 %3230 }
 0x849   : > { %v3340_v31 = vsel %vm3336_vm10, %v3323_v13, %v3231_v25 }
 0x84a   : > { %v3229_v29 = vpop.permute.xlu0 %3228 }
 0x84b   : > { %v3339_v33 = vsel %vm3336_vm10, %v3322_v36, %v3229_v29 }
 0x84c   : > { %v3279_v32 = vpop.permute.xlu1 %3278 }
 0x84d   : > { %v3357_v53 = vsel %vm3353_vm11, %v3340_v31, %v3279_v32 }
 0x84e   : > { %3373 = vst [vmem:[%s5622_s8 + $0x18] sm:$0xff] %v3357_v53  ;;  %v3277_v34 = vpop.permute.xlu0 %3276 }
 0x84f   : > { %v3356_v12 = vsel %vm3353_vm11, %v3339_v33, %v3277_v34 }
 0x850   : > { %3372 = vst [vmem:[%s5622_s8 + $0x10] sm:$0xff] %v3356_v12  ;;  %v3187_v63 = vpop.permute.xlu1 %3186 }
 0x851   : > { %v3325_v40 = vsel %vm334_vm1, %v5486_v15, %v3187_v63 }
 0x852   : > { %v3185_v35 = vpop.permute.xlu0 %3184 }
 0x853   : > { %v3324_v57 = vsel %vm334_vm1, %v5493_v18, %v3185_v35 }
 0x854   : > { %v3235_v27 = vpop.permute.xlu1 %3234 }
 0x855   : > { %v3342_v1 = vsel %vm3336_vm10, %v3325_v40, %v3235_v27 }
 0x856   : > { %v3233_v2 = vpop.permute.xlu0 %3232 }
 0x857   : > { %v3341_v11 = vsel %vm3336_vm10, %v3324_v57, %v3233_v2 }
 0x858   : > { %v3283_v43 = vpop.permute.xlu1 %3282 }
 0x859   : > { %v3359_v46 = vsel %vm3353_vm11, %v3342_v1, %v3283_v43 }
 0x85a   : > { %3375 = vst [vmem:[%s5622_s8 + $0x28] sm:$0xff] %v3359_v46  ;;  %v3281_v8 = vpop.permute.xlu0 %3280 }
 0x85b   : > { %v3358_v47 = vsel %vm3353_vm11, %v3341_v11, %v3281_v8 }
 0x85c   : > { %3374 = vst [vmem:[%s5622_s8 + $0x20] sm:$0xff] %v3358_v47  ;;  %v3191_v48 = vpop.permute.xlu1 %3190 }
 0x85d   : > { %v3327_v28 = vsel %vm334_vm1, %v5508_v24, %v3191_v48 }
 0x85e   : > { %v3189_v38 = vpop.permute.xlu0 %3188 }
 0x85f   : > { %v3326_v51 = vsel %vm334_vm1, %v5515_v4, %v3189_v38 }
 0x860   : > { %v3239_v15 = vpop.permute.xlu1 %3238 }
 0x861   : > { %v3344_v18 = vsel %vm3336_vm10, %v3327_v28, %v3239_v15 }
 0x862   : > { %v3237_v49 = vpop.permute.xlu0 %3236 }
 0x863   : > { %v3343_v39 = vsel %vm3336_vm10, %v3326_v51, %v3237_v49 }
 0x864   : > { %v3287_v50 = vpop.permute.xlu1 %3286 }
 0x865   : > { %v3361_v16 = vsel %vm3353_vm11, %v3344_v18, %v3287_v50 }
 0x866   : > { %3377 = vst [vmem:[%s5622_s8 + $0x38] sm:$0xff] %v3361_v16  ;;  %v3285_v52 = vpop.permute.xlu0 %3284 }
 0x867   : > { %v3360_v55 = vsel %vm3353_vm11, %v3343_v39, %v3285_v52 }
 0x868   : > { %3376 = vst [vmem:[%s5622_s8 + $0x30] sm:$0xff] %v3360_v55  ;;  %v3195_v30 = vpop.permute.xlu1 %3194 }
 0x869   : > { %v3329_v17 = vsel %vm334_vm1, %v5530_v7, %v3195_v30 }
 0x86a   : > { %v3193_v58 = vpop.permute.xlu0 %3192 }
 0x86b   : > { %v3328_v59 = vsel %vm334_vm1, %v5537_v41, %v3193_v58 }
 0x86c   : > { %v3243_v24 = vpop.permute.xlu1 %3242 }
 0x86d   : > { %v3346_v4 = vsel %vm3336_vm10, %v3329_v17, %v3243_v24 }
 0x86e   : > { %v3241_v14 = vpop.permute.xlu0 %3240 }
 0x86f   : > { %v3345_v0 = vsel %vm3336_vm10, %v3328_v59, %v3241_v14 }
 0x870   : > { %v3291_v44 = vpop.permute.xlu1 %3290 }
 0x871   : > { %v3363_v62 = vsel %vm3353_vm11, %v3346_v4, %v3291_v44 }
 0x872   : > { %3379 = vst [vmem:[%s5622_s8 + $0x48] sm:$0xff] %v3363_v62  ;;  %v3289_v3 = vpop.permute.xlu0 %3288 }
 0x873   : > { %v3362_v5 = vsel %vm3353_vm11, %v3345_v0, %v3289_v3 }
 0x874   : > { %3378 = vst [vmem:[%s5622_s8 + $0x40] sm:$0xff] %v3362_v5  ;;  %v3199_v6 = vpop.permute.xlu1 %3198 }
 0x875   : > { %v3331_v42 = vsel %vm334_vm1, %v5552_v23, %v3199_v6 }
 0x876   : > { %v3197_v9 = vpop.permute.xlu0 %3196 }
 0x877   : > { %v3330_v20 = vsel %vm334_vm1, %v5559_v26, %v3197_v9 }
 0x878   : > { %v3247_v7 = vpop.permute.xlu1 %3246 }
 0x879   : > { %v3348_v41 = vsel %vm3336_vm10, %v3331_v42, %v3247_v7 }
 0x87a   : > { %v3245_v10 = vpop.permute.xlu0 %3244 }
 0x87b   : > { %v3347_v54 = vsel %vm3336_vm10, %v3330_v20, %v3245_v10 }
 0x87c   : > { %v3295_v45 = vpop.permute.xlu1 %3294 }
 0x87d   : > { %v3365_v19 = vsel %vm3353_vm11, %v3348_v41, %v3295_v45 }
 0x87e   : > { %3381 = vst [vmem:[%s5622_s8 + $0x58] sm:$0xff] %v3365_v19  ;;  %v3293_v22 = vpop.permute.xlu0 %3292 }
 0x87f   : > { %v3364_v37 = vsel %vm3353_vm11, %v3347_v54, %v3293_v22 }
 0x880   : > { %3380 = vst [vmem:[%s5622_s8 + $0x50] sm:$0xff] %v3364_v37  ;;  %v3203_v25 = vpop.permute.xlu1 %3202 }
 0x881   : > { %v3333_v26 = vsel %vm334_vm1, %v5574_v21, %v3203_v25 }
 0x882   : > { %v3201_v29 = vpop.permute.xlu0 %3200 }
 0x883   : > { %v3332_v36 = vsel %vm334_vm1, %v5581_v56, %v3201_v29 }
 0x884   : > { %v3251_v23 = vpop.permute.xlu1 %3250 }
 0x885   : > { %v3350_v31 = vsel %vm3336_vm10, %v3333_v26, %v3251_v23 }
 0x886   : > { %v3249_v13 = vpop.permute.xlu0 %3248 }
 0x887   : > { %v3349_v33 = vsel %vm3336_vm10, %v3332_v36, %v3249_v13 }
 0x888   : > { %v3299_v32 = vpop.permute.xlu1 %3298 }
 0x889   : > { %v3367_v53 = vsel %vm3353_vm11, %v3350_v31, %v3299_v32 }
 0x88a   : > { %3383 = vst [vmem:[%s5622_s8 + $0x68] sm:$0xff] %v3367_v53  ;;  %v3297_v34 = vpop.permute.xlu0 %3296 }
 0x88b   : > { %v3366_v12 = vsel %vm3353_vm11, %v3349_v33, %v3297_v34 }
 0x88c   : > { %3382 = vst [vmem:[%s5622_s8 + $0x60] sm:$0xff] %v3366_v12  ;;  %v3207_v63 = vpop.permute.xlu1 %3206 }
 0x88d   : > { %v3335_v56 = vsel %vm334_vm1, %v5596_v60, %v3207_v63 }
 0x88e   : > { %v3205_v35 = vpop.permute.xlu0 %3204 }
 0x88f   : > { %v3334_v1 = vsel %vm334_vm1, %v5600_v61, %v3205_v35 }
 0x890   : > { %v3255_v21 = vpop.permute.xlu1 %3254 }
 0x891   : > { %v3352_v2 = vsel %vm3336_vm10, %v3335_v56, %v3255_v21 }
 0x892   : > { %v3253_v27 = vpop.permute.xlu0 %3252 }
 0x893   : > { %v3351_v60 = vsel %vm3336_vm10, %v3334_v1, %v3253_v27 }
 0x894   : > { %v3303_v40 = vpop.permute.xlu1 %3302 }
 0x895   : > { %v3369_v43 = vsel %vm3353_vm11, %v3352_v2, %v3303_v40 }
 0x896   : > { %3385 = vst [vmem:[%s5622_s8 + $0x78] sm:$0xff] %v3369_v43  ;;  %v3301_v57 = vpop.permute.xlu0 %3300 }
 0x897   : > { %v3368_v46 = vsel %vm3353_vm11, %v3351_v60, %v3301_v57 }
 0x898   : > { %3384 = vst [vmem:[%s5622_s8 + $0x70] sm:$0xff] %v3368_v46 }
 0x899   : > { %4409 = shalt.err (!%p4406_p3)
}
 0x89a   : > { %s4410_s15 = scalar_lea.hbm %s5698_s21, 2048  ;;  %s4414_s18 = scalar_lea.hbm %s5755_s7, 4096 }
 0x89b   : > { %p4411_p4 = scmp.ne.s32.totalorder %s5698_s21, %s4410_s15  ;;  %p4415_p9 = scmp.lt.s32.totalorder %s5698_s21, %s5755_s7 }
 0x89c   : > { %p4416_p10 = scmp.lt.s32.totalorder %s4414_s18, %s4410_s15 }
 0x89d   : > { %p4412_p7 = pnand %p4411_p4, %p4542_p5 }
 0x89e   : > { %p4417_p11 = por %p4416_p10, %p4415_p9 }
 0x89f   : > { %p4413_p8 = pneg %p4412_p7 }
 0x8a1   : > { %p4418_p12 = pnand %p4417_p11, %p4413_p8 }
 0x8a3   : > { %4421 = shalt.err (!%p4418_p12)
}
 0x8a4   : > { %s4462_s19 = smov 128   ;;  %s4463_s20 = smov 8  }
 0x8a5   : > { %4288 = dma.vmem_to_hbm [thread:$0]  (%p4542_p5), %s5700_s14, 2048, %s5698_s21, %s5708_s28, %s4462_s19, %s4462_s19, %s4463_s20  }
 0x8a6 PF: > { %p4294_p13 = scmp.ge.s32.totalorder %s4456_s27, 2  ;;  %s3415_s23 = sand.u32 1, %s4444_s24  }
 0x8a7   : > { %s3416_s29 = scalar_lea.sflag [#allocation3], %s3415_s23 }
 0x8a8   : > { %p4291_p0 = pnand %p4294_p13, %p4546_p6 }
 0x8aa   : > { %p4292_p1 = pneg %p4291_p0 }
 0x8ac   : > { %4439 = dma.done.wait (%p4292_p1), %s3416_s29, 2048  }
 0x8ad   : > { %4441 = vsyncadd (%p4292_p1), %s3416_s29, 4294965248  ;;  %p17_p2 = scmp.ge.s32.totalorder %s4529_s30, 4   ;;  %s5758_s24 = smov %s4448_s25 }
 0x8ae   : > { %s5759_s25 = smov %s4452_s26  ;;  %s5760_s26 = smov %s4540_s10 }
 0x8af   : > { %s5761_s27 = smov %s4529_s30  ;;  %19 = sbr.rel (!%p17_p2) target bundleno = 3 (0x3), region = 94 }
 0x8b4   :  { %3421 = vsyncpa [#allocation3], 1 }
 0x8b5   :  { %3423 = vsyncpa [#allocation3 + $0x1], 1 }

</bundles_post_ra>
